<compile_context>
chip_gen: v6e
topology: v6e:2x2x1
jax: 0.10.0
libtpu: 0.0.40
codegen_flags: <defaults>
</compile_context>

<pallas_src>
import functools

import jax
import jax.numpy as jnp
from jax.experimental import pallas as pl
from jax.experimental.pallas import tpu as pltpu

L_SEQ = 15            # Attention(32, 15) fixes the sequence length
C0 = 32               # conv_0 out channels
C1 = 64               # conv_1 out channels
C2 = 20               # conv_2 out channels
K = 3                 # conv kernel size
L1 = L_SEQ - (K - 1)  # 13
L2 = L1 - (K - 1)     # 11
NEG_SLOPE = 0.01      # torch.nn.LeakyReLU default
BN_EPS = 1e-5

F0 = L_SEQ * C0       # 480  flattened width after conv_0
F1 = L1 * C1          # 832  flattened width after conv_1
F2 = C2 * L2          # 220  flattened width after conv_2 (NCL order: d2*11 + l)


def _leaky(x):
    return jnp.where(x > 0, x, NEG_SLOPE * x)


def encoder_kernel(x_ref, w0_ref, wlog_ref, ba_ref, e_ref,
                   w1_ref, t1_ref, w2_ref, t2_ref,
                   o_ref, *, approx_recip):
    # x_ref block: (BB, cin*15) in compute dtype.  All matmuls are 2-D with M = BB,
    # bf16 operands by default, f32 accumulation; elementwise math stays f32.
    x = x_ref[...]
    cdt = x.dtype

    # conv_0 (k=1, no bias) at every position, as one dense matmul.
    y0 = jnp.dot(x, w0_ref[...], preferred_element_type=jnp.float32)        # (BB, 480) f32

    # Attention logits directly from x (Wlog = W0_big @ Wa_big folded offline):
    # tiny matmul, runs in parallel with conv_0 instead of serially after it.
    logits = jnp.dot(x, wlog_ref[...],
                     preferred_element_type=jnp.float32) + ba_ref[...]      # (BB, 15)
    logits = logits - jnp.max(logits, axis=-1, keepdims=True)
    p = jnp.exp(logits)
    denom = jnp.sum(p, axis=-1, keepdims=True)
    attn = p * pl.reciprocal(denom, approx=approx_recip)                    # (BB, 15)

    # Broadcast attn back over the 32 channels of each position via a 0/1
    # expansion matrix (pure matmul; avoids lane-axis repeat/reshape).
    attn_e = jnp.dot(attn.astype(cdt), e_ref[...],
                     preferred_element_type=jnp.float32)                    # (BB, 480)
    y = (y0 * attn_e).astype(cdt)

    # conv_1 (k=3, 32 -> 64); BN_1 scale folded into W1, shift + LeakyReLU in f32.
    z1 = jnp.dot(y, w1_ref[...], preferred_element_type=jnp.float32)        # (BB, 832)
    h1 = _leaky(z1 + t1_ref[...]).astype(cdt)

    # conv_2 (k=3, 64 -> 20); BN_2 scale folded into W2, output already in NCL
    # flat order (d2*11 + l).
    z2 = jnp.dot(h1, w2_ref[...], preferred_element_type=jnp.float32)       # (BB, 220)
    o_ref[...] = _leaky(z2 + t2_ref[...])


def cnn_peptide_encoder(x_ncl, kparams, *, block_batch=1024,
                        compute_dtype=jnp.bfloat16):
    """x_ncl: (B, input_dim, 15) float32, PyTorch NCL layout. Returns (B, 20, 11).

    compute_dtype=jnp.bfloat16 (default): single-pass MXU + half the weight/activation
    DMA bytes; accumulation stays f32.  compute_dtype=jnp.float32 gives an exact path."""
    B, cin, L = x_ncl.shape
    assert L == L_SEQ, "Attention(32, 15) requires sequence length 15"
    assert block_batch % 16 == 0
    W0, Wlog, ba, E, W1, t1, W2, t2 = kparams
    cinL = cin * L_SEQ
    itemsize = jnp.dtype(compute_dtype).itemsize

    # Free (contiguous) flatten of the NCL input: index c*15 + l. No transpose.
    x_flat = x_ncl.reshape(B, cinL).astype(compute_dtype)

    # Batch blocking: BB rows per grid step, sublane-aligned, and an EVEN number of
    # grid steps whenever the batch allows so both v7x TensorCores get equal work.
    if B < 16:
        bb = B                                   # single step; block == full array
    elif B <= block_batch:
        bb = (-(-B // 2) + 7) // 8 * 8           # exactly 2 steps
    else:
        half_steps = -(-B // (2 * block_batch))  # target nblk = 2*half_steps (even)
        bb = (-(-B // (2 * half_steps)) + 7) // 8 * 8
    b_pad = -(-B // bb) * bb
    if b_pad != B:
        x_flat = jnp.pad(x_flat, ((0, b_pad - B), (0, 0)))   # zero rows: softmax-safe
    nblk = b_pad // bb

    cast = lambda a: a.astype(compute_dtype)

    flops = 2 * b_pad * (cinL * F0            # conv_0 dense
                         + cinL * L_SEQ       # attention logits (folded)
                         + L_SEQ * F0         # attention expand
                         + F0 * F1            # conv_1 dense
                         + F1 * F2)           # conv_2 dense
    weight_bytes = (int(W0.size + Wlog.size + E.size + W1.size + W2.size) * itemsize
                    + int(ba.size + t1.size + t2.size) * 4)
    bytes_accessed = b_pad * cinL * itemsize + b_pad * F2 * 4 + weight_bytes

    # VMEM budget: double-buffered x/out blocks + weights + f32 intermediates, with a
    # 2x safety margin (clamped to [16 MiB, 64 MiB]).  ~34 MiB at bb=1024/bf16/cin=20.
    vmem_est = (2 * bb * cinL * itemsize          # x (double-buffered)
                + 2 * bb * F2 * 4                 # out (double-buffered)
                + 2 * weight_bytes                # resident weights (conservative x2)
                + bb * (2 * F0 + F1 + F2) * 4     # f32 intermediates y0/attn_e/z1/z2
                + bb * (F0 + F1) * itemsize)      # compute-dtype copies fed to the MXU
    vmem_limit = int(min(64 << 20, max(16 << 20, 2 * vmem_est)))

    approx_recip = jnp.dtype(compute_dtype) != jnp.dtype(jnp.float32)
    kern = functools.partial(encoder_kernel, approx_recip=bool(approx_recip))

    out_flat = pl.pallas_call(
        kern,
        out_shape=jax.ShapeDtypeStruct((b_pad, F2), jnp.float32),
        grid=(nblk,),
        in_specs=[
            pl.BlockSpec((bb, cinL),     lambda b: (b, 0)),   # x (flattened NCL)
            pl.BlockSpec((cinL, F0),     lambda b: (0, 0)),   # W0_big
            pl.BlockSpec((cinL, L_SEQ),  lambda b: (0, 0)),   # Wlog (= W0_big @ Wa_big)
            pl.BlockSpec((1, L_SEQ),     lambda b: (0, 0)),   # ba (lane layout)
            pl.BlockSpec((L_SEQ, F0),    lambda b: (0, 0)),   # attn expansion E
            pl.BlockSpec((F0, F1),       lambda b: (0, 0)),   # W1_big * bn1_scale
            pl.BlockSpec((1, F1),        lambda b: (0, 0)),   # bn_1 shift (flat)
            pl.BlockSpec((F1, F2),       lambda b: (0, 0)),   # W2_big * bn2_scale
            pl.BlockSpec((1, F2),        lambda b: (0, 0)),   # bn_2 shift (flat)
        ],
        out_specs=pl.BlockSpec((bb, F2), lambda b: (b, 0)),
        compiler_params=pltpu.CompilerParams(
            dimension_semantics=("parallel",),
            vmem_limit_bytes=vmem_limit),
        cost_estimate=pl.CostEstimate(flops=int(flops),
                                      transcendentals=int(b_pad * (L_SEQ + 1)),
                                      bytes_accessed=int(bytes_accessed)),
    )(x_flat, cast(W0), cast(Wlog), ba, cast(E),
      cast(W1), t1, cast(W2), t2)

    # Free reshape: flat index d2*11 + l  ->  (B, 20, 11) PyTorch NCL output.
    return out_flat[:B].reshape(B, C2, L2)


# ----------------------------------------------------------------------------
# Parameter glue: torch-like parameters -> flattened dense kernel parameters.
# ----------------------------------------------------------------------------
def init_torch_like_params(key, input_dim):
    """Deterministic synthetic parameters matching the torch module's shapes."""
    ks = jax.random.split(key, 16)
    p = {}
    p['w0_t'] = 0.1 * jax.random.normal(ks[0], (C0, input_dim, 1), jnp.float32)
    p['wa'] = 0.1 * jax.random.normal(ks[1], (L_SEQ, C0), jnp.float32)
    p['ba'] = 0.1 * jax.random.normal(ks[2], (L_SEQ,), jnp.float32)
    p['w1_t'] = 0.1 * jax.random.normal(ks[3], (C1, C0, K), jnp.float32)
    p['b1'] = 0.1 * jax.random.normal(ks[4], (C1,), jnp.float32)
    p['g1'] = 1.0 + 0.1 * jax.random.normal(ks[5], (C1,), jnp.float32)
    p['beta1'] = 0.1 * jax.random.normal(ks[6], (C1,), jnp.float32)
    p['mean1'] = 0.1 * jax.random.normal(ks[7], (C1,), jnp.float32)
    p['var1'] = 1.0 + 0.1 * jnp.abs(jax.random.normal(ks[8], (C1,), jnp.float32))
    p['w2_t'] = 0.1 * jax.random.normal(ks[9], (C2, C1, K), jnp.float32)
    p['b2'] = 0.1 * jax.random.normal(ks[10], (C2,), jnp.float32)
    p['g2'] = 1.0 + 0.1 * jax.random.normal(ks[11], (C2,), jnp.float32)
    p['beta2'] = 0.1 * jax.random.normal(ks[12], (C2,), jnp.float32)
    p['mean2'] = 0.1 * jax.random.normal(ks[13], (C2,), jnp.float32)
    p['var2'] = 1.0 + 0.1 * jnp.abs(jax.random.normal(ks[14], (C2,), jnp.float32))
    return p


def prepare_params(p):
    """Fold eval-mode BN (scale into weights, shift kept) + conv bias, fold the
    attention-logit weights into a single x->logits matrix, and materialise the
    block-sparse conv weights as dense matrices over the flattened axis."""
    cin = p['w0_t'].shape[1]
    eyeL = jnp.eye(L_SEQ, dtype=jnp.float32)

    # conv_0: W0_big[c*15 + l, l'*32 + d] = w0[c, d] * (l == l')
    w0 = jnp.transpose(p['w0_t'][:, :, 0], (1, 0))                     # (cin, 32)
    W0 = (w0[:, None, None, :] * eyeL[None, :, :, None]).reshape(cin * L_SEQ, F0)

    # Attention logits folded to act on x directly:
    #   Wlog[c*15 + l, l'] = (sum_d w0[c, d] * wa[l, d]) * (l == l');  ba as (1, 15)
    m = jnp.dot(w0, p['wa'].T)                                         # (cin, 15)
    Wlog = (m[:, :, None] * eyeL[None, :, :]).reshape(cin * L_SEQ, L_SEQ)
    ba = p['ba'].reshape(1, L_SEQ)
    # Expansion: E[l, l'*32 + d] = (l == l')
    E = jnp.repeat(eyeL, C0, axis=1)                                   # (15, 480)

    # conv_1 + bn_1: W1_big[lp*32 + c, l*64 + d1] = w1[lp - l, c, d1] (tap in range),
    # then the BN scale is folded into the weight columns; only the shift stays.
    w1 = jnp.transpose(p['w1_t'], (2, 1, 0))                           # (K, 32, 64)
    W1_4 = jnp.zeros((L_SEQ, C0, L1, C1), jnp.float32)
    for k in range(K):
        mask = (jnp.arange(L_SEQ)[:, None] ==
                (jnp.arange(L1)[None, :] + k)).astype(jnp.float32)     # (15, 13)
        W1_4 = W1_4 + mask[:, None, :, None] * w1[k][None, :, None, :]
    s1v = p['g1'] / jnp.sqrt(p['var1'] + BN_EPS)
    t1v = (p['b1'] - p['mean1']) * s1v + p['beta1']
    s1_flat = jnp.tile(s1v, L1)                                        # (F1,)
    W1 = W1_4.reshape(F0, F1) * s1_flat[None, :]
    t1 = jnp.tile(t1v, L1).reshape(1, F1)

    # conv_2 + bn_2, output flat in NCL order:
    # W2_big[lp*64 + c, d2*11 + l] = w2[lp - l, c, d2] (tap in range), BN scale folded.
    w2 = jnp.transpose(p['w2_t'], (2, 1, 0))                           # (K, 64, 20)
    W2_4 = jnp.zeros((L1, C1, C2, L2), jnp.float32)
    for k in range(K):
        mask = (jnp.arange(L1)[:, None] ==
                (jnp.arange(L2)[None, :] + k)).astype(jnp.float32)     # (13, 11)
        W2_4 = W2_4 + mask[:, None, None, :] * w2[k][None, :, :, None]
    s2v = p['g2'] / jnp.sqrt(p['var2'] + BN_EPS)
    t2v = (p['b2'] - p['mean2']) * s2v + p['beta2']
    s2_flat = jnp.repeat(s2v, L2)                                      # (F2,)
    W2 = W2_4.reshape(F1, F2) * s2_flat[None, :]
    t2 = jnp.repeat(t2v, L2).reshape(1, F2)

    return (W0, Wlog, ba, E, W1, t1, W2, t2)


# ----------------------------------------------------------------------------
# Pure-JAX reference mirroring the torch forward (eval-mode BN), NCL layout.
# ----------------------------------------------------------------------------
def reference(x_ncl, p):
    x = x_ncl.astype(jnp.float32)
    w0 = p['w0_t'][:, :, 0]                                            # (32, cin)
    y0 = jnp.einsum('dc,bcl->bdl', w0, x)                              # (B, 32, 15)
    sf = jnp.transpose(y0, (0, 2, 1))                                  # (B, 15, 32)
    logits = jnp.einsum('bld,ld->bl', sf, p['wa']) + p['ba'][None, :]
    attn = jax.nn.softmax(logits, axis=1)
    y = jnp.transpose(sf * attn[:, :, None], (0, 2, 1))                # (B, 32, 15)

    def conv_bn_lrelu(h, w_t, b, gamma, beta, mean, var):
        kk = w_t.shape[2]
        lo = h.shape[-1] - (kk - 1)
        z = sum(jnp.einsum('dc,bcl->bdl', w_t[:, :, k], h[:, :, k:k + lo])
                for k in range(kk))
        z = z + b[None, :, None]
        z = ((z - mean[None, :, None]) / jnp.sqrt(var[None, :, None] + BN_EPS)
             * gamma[None, :, None] + beta[None, :, None])
        return jax.nn.leaky_relu(z, NEG_SLOPE)

    h1 = conv_bn_lrelu(y, p['w1_t'], p['b1'], p['g1'], p['beta1'],
                       p['mean1'], p['var1'])
    h2 = conv_bn_lrelu(h1, p['w2_t'], p['b2'], p['g2'], p['beta2'],
                       p['mean2'], p['var2'])
    return h2                                                          # (B, 20, 11)


if __name__ == "__main__":
    key = jax.random.PRNGKey(0)
    k_x, k_p, k_x2 = jax.random.split(key, 3)

    input_dim = 20
    p = init_torch_like_params(k_p, input_dim)
    kparams = prepare_params(p)

    x_small = jax.random.normal(k_x, (2, input_dim, L_SEQ), jnp.float32)
    x_big = jax.random.normal(k_x2, (37, input_dim, L_SEQ), jnp.float32)
    ref_small = jax.block_until_ready(reference(x_small, p))
    ref_big = jax.block_until_ready(reference(x_big, p))

    # Default fast path (bf16 MXU operands, f32 accumulation/elementwise).
    out_small = jax.block_until_ready(cnn_peptide_encoder(x_small, kparams))
    assert out_small.shape == (2, C2, L2), out_small.shape
    assert jnp.allclose(out_small, ref_small, atol=2e-2, rtol=2e-2), \
        "mismatch vs JAX reference (small batch, bf16 path)"

    out_big = jax.block_until_ready(cnn_peptide_encoder(x_big, kparams))
    assert out_big.shape == (37, C2, L2), out_big.shape
    assert jnp.allclose(out_big, ref_big, atol=2e-2, rtol=2e-2), \
        "mismatch vs JAX reference (batch-blocked path, bf16)"

    # Full-precision path: exact semantics check against the f32 reference.
    out_f32 = jax.block_until_ready(
        cnn_peptide_encoder(x_big, kparams, compute_dtype=jnp.float32))
    assert jnp.allclose(out_f32, ref_big, atol=2e-4, rtol=2e-4), \
        "mismatch vs JAX reference (f32 exactness path)"

    print("KERNEL_OK")
</pallas_src>

<mosaic_0001>
module attributes {stable_mosaic.version = 11 : i64} {
  func.func @encoder_kernel(%arg0: i32, %arg1: memref<2x300xbf16, #tpu.memory_space<vmem>>, %arg2: memref<300x480xbf16, #tpu.memory_space<vmem>>, %arg3: memref<300x15xbf16, #tpu.memory_space<vmem>>, %arg4: memref<1x15xf32, #tpu.memory_space<vmem>>, %arg5: memref<15x480xbf16, #tpu.memory_space<vmem>>, %arg6: memref<480x832xbf16, #tpu.memory_space<vmem>>, %arg7: memref<1x832xf32, #tpu.memory_space<vmem>>, %arg8: memref<832x220xbf16, #tpu.memory_space<vmem>>, %arg9: memref<1x220xf32, #tpu.memory_space<vmem>>, %arg10: memref<2x220xf32, #tpu.memory_space<vmem>>) attributes {dimension_semantics = [#tpu.dimension_semantics<parallel>], iteration_bounds = array<i64: 1>, scalar_prefetch = 0 : i64, scratch_operands = 0 : i64, tpu.core_type = #tpu.core_type<tc>, window_params = [{transform_indices = @transform_0, window_bounds = array<i64: 2, 300>}, {pipeline_mode = #tpu.pipeline_mode<synchronous>, transform_indices = @transform_1, window_bounds = array<i64: 300, 480>}, {pipeline_mode = #tpu.pipeline_mode<synchronous>, transform_indices = @transform_2, window_bounds = array<i64: 300, 15>}, {pipeline_mode = #tpu.pipeline_mode<synchronous>, transform_indices = @transform_3, window_bounds = array<i64: 1, 15>}, {pipeline_mode = #tpu.pipeline_mode<synchronous>, transform_indices = @transform_4, window_bounds = array<i64: 15, 480>}, {pipeline_mode = #tpu.pipeline_mode<synchronous>, transform_indices = @transform_5, window_bounds = array<i64: 480, 832>}, {pipeline_mode = #tpu.pipeline_mode<synchronous>, transform_indices = @transform_6, window_bounds = array<i64: 1, 832>}, {pipeline_mode = #tpu.pipeline_mode<synchronous>, transform_indices = @transform_7, window_bounds = array<i64: 832, 220>}, {pipeline_mode = #tpu.pipeline_mode<synchronous>, transform_indices = @transform_8, window_bounds = array<i64: 1, 220>}, {transform_indices = @transform_9, window_bounds = array<i64: 2, 220>}]} {
    %c0 = arith.constant 0 : index
    %c0_0 = arith.constant 0 : index
    %0 = vector.load %arg1[%c0, %c0_0] : memref<2x300xbf16, #tpu.memory_space<vmem>>, vector<2x300xbf16>
    %c0_1 = arith.constant 0 : index
    %c0_2 = arith.constant 0 : index
    %1 = vector.load %arg2[%c0_1, %c0_2] : memref<300x480xbf16, #tpu.memory_space<vmem>>, vector<300x480xbf16>
    %cst = arith.constant dense<0.000000e+00> : vector<2x480xf32>
    %2 = tpu.matmul %0, %1, %cst {dimension_numbers = #tpu.dot_dimension_numbers<[1], [0], [0], [1], [0, 0, 1, 1], [], []>} : vector<2x300xbf16>, vector<300x480xbf16>, vector<2x480xf32> -> vector<2x480xf32>
    %c0_3 = arith.constant 0 : index
    %c0_4 = arith.constant 0 : index
    %3 = vector.load %arg3[%c0_3, %c0_4] : memref<300x15xbf16, #tpu.memory_space<vmem>>, vector<300x15xbf16>
    %cst_5 = arith.constant dense<0.000000e+00> : vector<2x15xf32>
    %4 = tpu.matmul %0, %3, %cst_5 {dimension_numbers = #tpu.dot_dimension_numbers<[1], [0], [0], [1], [0, 0, 1, 1], [], []>} : vector<2x300xbf16>, vector<300x15xbf16>, vector<2x15xf32> -> vector<2x15xf32>
    %c0_6 = arith.constant 0 : index
    %c0_7 = arith.constant 0 : index
    %5 = vector.load %arg4[%c0_6, %c0_7] : memref<1x15xf32, #tpu.memory_space<vmem>>, vector<1x15xf32>
    %6 = vector.broadcast %5 : vector<1x15xf32> to vector<2x15xf32>
    %7 = arith.addf %4, %6 : vector<2x15xf32>
    %cst_8 = arith.constant dense<0xFF800000> : vector<2xf32>
    %8 = vector.multi_reduction <maximumf>, %7, %cst_8 [1] : vector<2x15xf32> to vector<2xf32>
    %9 = vector.shape_cast %8 : vector<2xf32> to vector<2x1xf32>
    %10 = vector.broadcast %9 : vector<2x1xf32> to vector<2x15xf32>
    %11 = arith.subf %7, %10 : vector<2x15xf32>
    %12 = math.exp %11 : vector<2x15xf32>
    %cst_9 = arith.constant dense<0.000000e+00> : vector<2xf32>
    %13 = vector.multi_reduction <add>, %12, %cst_9 [1] : vector<2x15xf32> to vector<2xf32>
    %14 = vector.shape_cast %13 : vector<2xf32> to vector<2x1xf32>
    %15 = tpu.reciprocal %14 {approx = true} : vector<2x1xf32> -> vector<2x1xf32>
    %16 = vector.broadcast %15 : vector<2x1xf32> to vector<2x15xf32>
    %17 = arith.mulf %12, %16 : vector<2x15xf32>
    %18 = arith.truncf %17 : vector<2x15xf32> to vector<2x15xbf16>
    %c0_10 = arith.constant 0 : index
    %c0_11 = arith.constant 0 : index
    %19 = vector.load %arg5[%c0_10, %c0_11] : memref<15x480xbf16, #tpu.memory_space<vmem>>, vector<15x480xbf16>
    %cst_12 = arith.constant dense<0.000000e+00> : vector<2x480xf32>
    %20 = tpu.matmul %18, %19, %cst_12 {dimension_numbers = #tpu.dot_dimension_numbers<[1], [0], [0], [1], [0, 0, 1, 1], [], []>} : vector<2x15xbf16>, vector<15x480xbf16>, vector<2x480xf32> -> vector<2x480xf32>
    %21 = arith.mulf %2, %20 : vector<2x480xf32>
    %22 = arith.truncf %21 : vector<2x480xf32> to vector<2x480xbf16>
    %c0_13 = arith.constant 0 : index
    %c0_14 = arith.constant 0 : index
    %23 = vector.load %arg6[%c0_13, %c0_14] : memref<480x832xbf16, #tpu.memory_space<vmem>>, vector<480x832xbf16>
    %cst_15 = arith.constant dense<0.000000e+00> : vector<2x832xf32>
    %24 = tpu.matmul %22, %23, %cst_15 {dimension_numbers = #tpu.dot_dimension_numbers<[1], [0], [0], [1], [0, 0, 1, 1], [], []>} : vector<2x480xbf16>, vector<480x832xbf16>, vector<2x832xf32> -> vector<2x832xf32>
    %c0_16 = arith.constant 0 : index
    %c0_17 = arith.constant 0 : index
    %25 = vector.load %arg7[%c0_16, %c0_17] : memref<1x832xf32, #tpu.memory_space<vmem>>, vector<1x832xf32>
    %26 = vector.broadcast %25 : vector<1x832xf32> to vector<2x832xf32>
    %27 = arith.addf %24, %26 : vector<2x832xf32>
    %cst_18 = arith.constant 0.000000e+00 : f32
    %28 = vector.broadcast %cst_18 : f32 to vector<2x832xf32>
    %29 = arith.cmpf ogt, %27, %28 : vector<2x832xf32>
    %cst_19 = arith.constant 0.00999999977 : f32
    %30 = vector.broadcast %cst_19 : f32 to vector<2x832xf32>
    %31 = arith.mulf %30, %27 : vector<2x832xf32>
    %32 = arith.select %29, %27, %31 : vector<2x832xi1>, vector<2x832xf32>
    %33 = arith.truncf %32 : vector<2x832xf32> to vector<2x832xbf16>
    %c0_20 = arith.constant 0 : index
    %c0_21 = arith.constant 0 : index
    %34 = vector.load %arg8[%c0_20, %c0_21] : memref<832x220xbf16, #tpu.memory_space<vmem>>, vector<832x220xbf16>
    %cst_22 = arith.constant dense<0.000000e+00> : vector<2x220xf32>
    %35 = tpu.matmul %33, %34, %cst_22 {dimension_numbers = #tpu.dot_dimension_numbers<[1], [0], [0], [1], [0, 0, 1, 1], [], []>} : vector<2x832xbf16>, vector<832x220xbf16>, vector<2x220xf32> -> vector<2x220xf32>
    %c0_23 = arith.constant 0 : index
    %c0_24 = arith.constant 0 : index
    %36 = vector.load %arg9[%c0_23, %c0_24] : memref<1x220xf32, #tpu.memory_space<vmem>>, vector<1x220xf32>
    %37 = vector.broadcast %36 : vector<1x220xf32> to vector<2x220xf32>
    %38 = arith.addf %35, %37 : vector<2x220xf32>
    %cst_25 = arith.constant 0.000000e+00 : f32
    %39 = vector.broadcast %cst_25 : f32 to vector<2x220xf32>
    %40 = arith.cmpf ogt, %38, %39 : vector<2x220xf32>
    %cst_26 = arith.constant 0.00999999977 : f32
    %41 = vector.broadcast %cst_26 : f32 to vector<2x220xf32>
    %42 = arith.mulf %41, %38 : vector<2x220xf32>
    %43 = arith.select %40, %38, %42 : vector<2x220xi1>, vector<2x220xf32>
    %c0_27 = arith.constant 0 : index
    %c0_28 = arith.constant 0 : index
    %44 = vector.load %arg10[%c0_27, %c0_28] : memref<2x220xf32, #tpu.memory_space<vmem>>, vector<2x220xf32>
    tpu.vector_store %arg10[%c0_27, %c0_28], %43 {strides = array<i32>} : memref<2x220xf32, #tpu.memory_space<vmem>>, vector<2x220xf32>,
    return
  }
  func.func @transform_0(%arg0: i32) -> (i32, i32) {
    %c0_i32 = arith.constant 0 : i32
    %c0_i32_0 = arith.constant 0 : i32
    return %arg0, %c0_i32 : i32, i32
  }
  func.func @transform_1(%arg0: i32) -> (i32, i32) {
    %c0_i32 = arith.constant 0 : i32
    %c0_i32_0 = arith.constant 0 : i32
    %c0_i32_1 = arith.constant 0 : i32
    return %c0_i32, %c0_i32_0 : i32, i32
  }
  func.func @transform_2(%arg0: i32) -> (i32, i32) {
    %c0_i32 = arith.constant 0 : i32
    %c0_i32_0 = arith.constant 0 : i32
    %c0_i32_1 = arith.constant 0 : i32
    return %c0_i32, %c0_i32_0 : i32, i32
  }
  func.func @transform_3(%arg0: i32) -> (i32, i32) {
    %c0_i32 = arith.constant 0 : i32
    %c0_i32_0 = arith.constant 0 : i32
    %c0_i32_1 = arith.constant 0 : i32
    return %c0_i32, %c0_i32_0 : i32, i32
  }
  func.func @transform_4(%arg0: i32) -> (i32, i32) {
    %c0_i32 = arith.constant 0 : i32
    %c0_i32_0 = arith.constant 0 : i32
    %c0_i32_1 = arith.constant 0 : i32
    return %c0_i32, %c0_i32_0 : i32, i32
  }
  func.func @transform_5(%arg0: i32) -> (i32, i32) {
    %c0_i32 = arith.constant 0 : i32
    %c0_i32_0 = arith.constant 0 : i32
    %c0_i32_1 = arith.constant 0 : i32
    return %c0_i32, %c0_i32_0 : i32, i32
  }
  func.func @transform_6(%arg0: i32) -> (i32, i32) {
    %c0_i32 = arith.constant 0 : i32
    %c0_i32_0 = arith.constant 0 : i32
    %c0_i32_1 = arith.constant 0 : i32
    return %c0_i32, %c0_i32_0 : i32, i32
  }
  func.func @transform_7(%arg0: i32) -> (i32, i32) {
    %c0_i32 = arith.constant 0 : i32
    %c0_i32_0 = arith.constant 0 : i32
    %c0_i32_1 = arith.constant 0 : i32
    return %c0_i32, %c0_i32_0 : i32, i32
  }
  func.func @transform_8(%arg0: i32) -> (i32, i32) {
    %c0_i32 = arith.constant 0 : i32
    %c0_i32_0 = arith.constant 0 : i32
    %c0_i32_1 = arith.constant 0 : i32
    return %c0_i32, %c0_i32_0 : i32, i32
  }
  func.func @transform_9(%arg0: i32) -> (i32, i32) {
    %c0_i32 = arith.constant 0 : i32
    %c0_i32_0 = arith.constant 0 : i32
    return %arg0, %c0_i32 : i32, i32
  }
}

</mosaic_0001>

<bundles_post_ra>
// kernel: tpu_custom_call.1
= control target key start
LH: loop header
LB: loop body
LE: loop exit
PB: predicated region body
PF: predicated region fallthrough
CT: control target
= control target key end

     0   :  { %vm517_vm0 = vcmask 1045504   ;;  %v4745_v2 = vmov 0   ;;  %v123_v3 = vlaneseq  ;;  %v4746_v10 = vmov 1966171168   ;;  %s6172_s0 = inlined_call_operand.vmem [shape: bf16[2,300], index: 0, kind: input, shape index: {}]   ;;  %s6173_s1 = inlined_call_operand.vmem [shape: bf16[300,480], index: 1, kind: input, shape index: {}]   ;;  %s6174_s2 = inlined_call_operand.vmem [shape: bf16[300,15], index: 2, kind: input, shape index: {}]   ;;  %s6175_s3 = inlined_call_operand.vmem [shape: f32[1,15], index: 3, kind: input, shape index: {}]   ;;  %s6176_s4 = inlined_call_operand.vmem [shape: bf16[15,480], index: 4, kind: input, shape index: {}]   ;;  %s6177_s5 = inlined_call_operand.vmem [shape: bf16[480,832], index: 5, kind: input, shape index: {}]   ;;  %s6178_s6 = inlined_call_operand.vmem [shape: f32[1,832], index: 6, kind: input, shape index: {}]   ;;  %s6179_s7 = inlined_call_operand.vmem [shape: bf16[832,220], index: 7, kind: input, shape index: {}]   ;;  %s6180_s8 = inlined_call_operand.vmem [shape: f32[1,220], index: 8, kind: input, shape index: {}]   ;;  %s6181_s9 = inlined_call_operand.hbm [shape: f32[2,220], index: 9, kind: output, shape index: {}]  }
   0x1   :  { %v4124_v0 = vld [vmem:[%s6173_s1 + $0xe4] ss:$16 sps:$4 sm:$0xff]   ;;  %603 = vmatprep.mubr.bf16.mxu1 %v4745_v2  ;;  %v4128_v4 = vld [vmem:[%s6173_s1 + $0xe0] ss:$16 sps:$4 sm:$0xff]   ;;  %v121_v11 = vunpack.c.l.s4 %v4746_v10  ;;  %v4146_v23 = vld [vmem:[%s6173_s1 + $0xec] ss:$16 sps:$4 sm:$0xff]  }
   0x2   :  { %v4126_v1 = vld [vmem:[%s6173_s1 + $0x244] ss:$16 sps:$4 sm:$0x3f]   ;;  %530 = vmatprep.subr.bf16.mxu0 %v4124_v0  ;;  %v4129_v5 = vld [vmem:[%s6173_s1 + $0x240] ss:$16 sps:$4 sm:$0x3f]  }
   0x3   :  { %3709 = vmatprep.subr.msk.bf16.mxu1 %vm517_vm0, %v4126_v1  ;;  %v4130_v6 = vld [vmem:[%s6173_s1 + $0xc4] ss:$16 sps:$4 sm:$0xff]   ;;  %531 = vmatpush1.bf16.msra.mxu0 %v4128_v4  ;;  %v519_v7 = vsel %vm517_vm0, %v4129_v5, 0  ;;  %v4134_v9 = vld [vmem:[%s6173_s1 + $0xc0] ss:$16 sps:$4 sm:$0xff]   ;;  %v4829_v13 = vshrl.u32 %v123_v3, 7  ;;  %v122_v15 = vunpack.c.0.s8 %v121_v11 }
   0x4   :  { %v4132_v8 = vld [vmem:[%s6173_s1 + $0x224] ss:$16 sps:$4 sm:$0xff]   ;;  %582 = vmatpush1.bf16.msra.mxu1 %v519_v7  ;;  %532 = vmatprep.subr.bf16.mxu0 %v4130_v6  ;;  %v4135_v12 = vld [vmem:[%s6173_s1 + $0x220] ss:$16 sps:$4 sm:$0xff]   ;;  %vm513_vm1 = vcmask 359424   ;;  %vm4748_vm2 = vmmov 0  }
   0x5   :  { %583 = vmatprep.subr.bf16.mxu1 %v4132_v8  ;;  %v4136_v14 = vld [vmem:[%s6173_s1 + $0xa4] ss:$16 sps:$4 sm:$0xff]   ;;  %v4140_v17 = vld [vmem:[%s6173_s1 + $0xa0] ss:$16 sps:$4 sm:$0xff]   ;;  %v125_v20 = vsub.s32 %v122_v15, %v4829_v13  ;;  %v4144_v28 = vld [vmem:[%s6173_s1 + $0xe8] ss:$16 sps:$4 sm:$0xff]  }
   0x6   :  { %v4138_v16 = vld [vmem:[%s6173_s1 + $0x204] ss:$16 sps:$4 sm:$0xff]   ;;  %v4141_v18 = vld [vmem:[%s6173_s1 + $0x200] ss:$16 sps:$4 sm:$0xff]   ;;  %v4152_v30 = vld [vmem:[%s6173_s1 + $0xcc] ss:$16 sps:$4 sm:$0xff]  }
   0x7   :  { %533 = vmatpush1.bf16.msra.mxu0 %v4134_v9  ;;  %v4142_v19 = vld [vmem:[%s6173_s1 + $0x84] ss:$16 sps:$4 sm:$0xff]   ;;  %v3632_v21 = vld.sshfl [vmem:[%s6172_s0] sm:$0x13 pattern:$0x75316420] }
   0x8   :  { %584 = vmatpush1.bf16.msra.mxu1 %v4135_v12  ;;  %534 = vmatprep.subr.bf16.mxu0 %v4136_v14  ;;  %v4850_v22 = vrot.slane %v3632_v21, %v125_v20  ;;  %v119_v24 = vcombine.high %v3632_v21, %v3632_v21  ;;  %v4147_v26 = vld [vmem:[%s6173_s1 + $0x80] ss:$16 sps:$4 sm:$0xff]   ;;  %v4148_v29 = vld [vmem:[%s6173_s1 + $0x64] ss:$16 sps:$4 sm:$0xff]   ;;  %v4150_v31 = vld [vmem:[%s6173_s1 + $0xc8] ss:$16 sps:$4 sm:$0xff]  }
   0x9   :  { %585 = vmatprep.subr.bf16.mxu1 %v4138_v16  ;;  %v4153_v32 = vld [vmem:[%s6173_s1 + $0x60] ss:$16 sps:$4 sm:$0xff]   ;;  %v4154_v33 = vld [vmem:[%s6173_s1 + $0x44] ss:$16 sps:$4 sm:$0xff]   ;;  %v4158_v34 = vld [vmem:[%s6173_s1 + $0xac] ss:$16 sps:$4 sm:$0xff]  }
   0xa   :  { %v4857_v25 = vcombine.high %v4850_v22, %v4850_v22  ;;  %v4862_v27 = vrot.slane %v119_v24, %v125_v20  ;;  %v4159_v35 = vld [vmem:[%s6173_s1 + $0x40] ss:$16 sps:$4 sm:$0xff]   ;;  %v4156_v36 = vld [vmem:[%s6173_s1 + $0xa8] ss:$16 sps:$4 sm:$0xff]   ;;  %v4160_v37 = vld [vmem:[%s6173_s1 + $0x24] ss:$16 sps:$4 sm:$0xff]  }
   0xb   :  { %535 = vmatpush1.bf16.msra.mxu0 %v4140_v17  ;;  %v4164_v38 = vld [vmem:[%s6173_s1 + $0x8c] ss:$16 sps:$4 sm:$0xff]   ;;  %v4162_v39 = vld [vmem:[%s6173_s1 + $0x88] ss:$16 sps:$4 sm:$0xff]   ;;  %v4165_v40 = vld [vmem:[%s6173_s1 + $0x20] ss:$16 sps:$4 sm:$0xff]  }
   0xc   :  { %586 = vmatpush1.bf16.msra.mxu1 %v4141_v18  ;;  %536 = vmatprep.subr.bf16.mxu0 %v4142_v19  ;;  %v4166_v41 = vld [vmem:[%s6173_s1 + $0x4] ss:$16 sps:$4 sm:$0xff]   ;;  %v4170_v42 = vld [vmem:[%s6173_s1 + $0x6c] ss:$16 sps:$4 sm:$0xff]   ;;  %v4171_v43 = vld [vmem:[%s6173_s1] ss:$16 sps:$4 sm:$0xff]  }
   0xd   :  { %612 = vmatprep.subr.bf16.mxu1 %v4146_v23  ;;  %562 = vmatprep.mubr.bf16.mxu0 %v4862_v27  ;;  %v4168_v44 = vld [vmem:[%s6173_s1 + $0x68] ss:$16 sps:$4 sm:$0xff]   ;;  %v4172_v45 = vld [vmem:[%s6173_s1 + $0x1e4] ss:$16 sps:$4 sm:$0xff]   ;;  %v4176_v46 = vld [vmem:[%s6173_s1 + $0x4c] ss:$16 sps:$4 sm:$0xff]  }
   0xe   :  { %v4174_v47 = vld [vmem:[%s6173_s1 + $0x48] ss:$16 sps:$4 sm:$0xff]   ;;  %v4177_v48 = vld [vmem:[%s6173_s1 + $0x1e0] ss:$16 sps:$4 sm:$0xff]   ;;  %v4178_v49 = vld [vmem:[%s6173_s1 + $0x1c4] ss:$16 sps:$4 sm:$0xff]  }
   0xf   :  { %3710 = vmatmul.mubr.msk.bf16.vlgmr.msra.gmra.mxu1 %vm513_vm1, %v4857_v25  ;;  %537 = vmatpush1.bf16.msra.mxu0 %v4147_v26  ;;  %v4182_v50 = vld [vmem:[%s6173_s1 + $0x2c] ss:$16 sps:$4 sm:$0xff]   ;;  %v4183_v51 = vld [vmem:[%s6173_s1 + $0x1c0] ss:$16 sps:$4 sm:$0xff]   ;;  %v4180_v52 = vld [vmem:[%s6173_s1 + $0x28] ss:$16 sps:$4 sm:$0xff]  }
  0x10   :  { %613 = vmatpush1.bf16.msra.mxu1 %v4144_v28  ;;  %538 = vmatprep.subr.bf16.mxu0 %v4148_v29  ;;  %v4184_v53 = vld [vmem:[%s6173_s1 + $0x1a4] ss:$16 sps:$4 sm:$0xff]   ;;  %v4188_v54 = vld [vmem:[%s6173_s1 + $0xc] ss:$16 sps:$4 sm:$0xff]   ;;  %v4186_v55 = vld [vmem:[%s6173_s1 + $0x8] ss:$16 sps:$4 sm:$0xff]  }
  0x11   :  { %614 = vmatprep.subr.bf16.mxu1 %v4152_v30  ;;  %644 = vmatprep.mubr.bf16.mxu1 %v4862_v27  ;;  %v4189_v56 = vld [vmem:[%s6173_s1 + $0x1a0] ss:$16 sps:$4 sm:$0xff]   ;;  %v4190_v57 = vld [vmem:[%s6173_s1 + $0x184] ss:$16 sps:$4 sm:$0xff]   ;;  %v4194_v58 = vld [vmem:[%s6173_s1 + $0x1ec] ss:$16 sps:$4 sm:$0xff]  }
  0x12   :  { %v4192_v59 = vld [vmem:[%s6173_s1 + $0x1e8] ss:$16 sps:$4 sm:$0xff]   ;;  %v4195_v60 = vld [vmem:[%s6173_s1 + $0x180] ss:$16 sps:$4 sm:$0xff]   ;;  %v4196_v61 = vld [vmem:[%s6173_s1 + $0x164] ss:$16 sps:$4 sm:$0xff]  }
  0x13   :  { %539 = vmatpush1.bf16.msra.mxu0 %v4153_v32  ;;  %v4200_v62 = vld [vmem:[%s6173_s1 + $0x1cc] ss:$16 sps:$4 sm:$0xff]   ;;  %v4198_v63 = vld [vmem:[%s6173_s1 + $0x1c8] ss:$16 sps:$4 sm:$0xff]   ;;  %v4201_v0 = vld [vmem:[%s6173_s1 + $0x160] ss:$16 sps:$4 sm:$0xff]  }
  0x14   :  { %615 = vmatpush1.bf16.msra.mxu1 %v4150_v31  ;;  %540 = vmatprep.subr.bf16.mxu0 %v4154_v33  ;;  %v4202_v1 = vld [vmem:[%s6173_s1 + $0x144] ss:$16 sps:$4 sm:$0xff]   ;;  %v4206_v3 = vld [vmem:[%s6173_s1 + $0x1ac] ss:$16 sps:$4 sm:$0xff]   ;;  %v4204_v4 = vld [vmem:[%s6173_s1 + $0x1a8] ss:$16 sps:$4 sm:$0xff]  }
  0x15   :  { %616 = vmatprep.subr.bf16.mxu1 %v4158_v34  ;;  %v4207_v5 = vld [vmem:[%s6173_s1 + $0x140] ss:$16 sps:$4 sm:$0xff]   ;;  %v4208_v6 = vld [vmem:[%s6173_s1 + $0x124] ss:$16 sps:$4 sm:$0xff]   ;;  %v4212_v7 = vld [vmem:[%s6173_s1 + $0x18c] ss:$16 sps:$4 sm:$0xff]  }
  0x16   :  { %v4213_v8 = vld [vmem:[%s6173_s1 + $0x120] ss:$16 sps:$4 sm:$0xff]   ;;  %v4210_v9 = vld [vmem:[%s6173_s1 + $0x188] ss:$16 sps:$4 sm:$0xff]   ;;  %v4214_v10 = vld [vmem:[%s6173_s1 + $0x104] ss:$16 sps:$4 sm:$0xff]  }
  0x17   :  { %541 = vmatpush1.bf16.msra.mxu0 %v4159_v35  ;;  %v4218_v11 = vld [vmem:[%s6173_s1 + $0x16c] ss:$16 sps:$4 sm:$0xff]   ;;  %v4216_v12 = vld [vmem:[%s6173_s1 + $0x168] ss:$16 sps:$4 sm:$0xff]   ;;  %v4219_v14 = vld [vmem:[%s6173_s1 + $0x100] ss:$16 sps:$4 sm:$0xff]  }
  0x18   :  { %617 = vmatpush1.bf16.msra.mxu1 %v4156_v36  ;;  %542 = vmatprep.subr.bf16.mxu0 %v4160_v37  ;;  %v4223_v15 = vld [vmem:[%s6174_s2 + $0x78] sm:$0xff]   ;;  %v4228_v19 = vld [vmem:[%s6174_s2 + $0x70] sm:$0xff]   ;;  %v4233_v26 = vld [vmem:[%s6174_s2 + $0x68] sm:$0xff]  }
  0x19   :  { %618 = vmatprep.subr.bf16.mxu1 %v4164_v38  ;;  %v4222_v16 = vld [vmem:[%s6173_s1 + $0x14c] ss:$16 sps:$4 sm:$0xff]   ;;  %v4220_v17 = vld [vmem:[%s6173_s1 + $0x148] ss:$16 sps:$4 sm:$0xff]   ;;  %v4229_v23 = vld [vmem:[%s6174_s2 + $0x30] sm:$0xff]  }
  0x1a   :  { %v4224_v18 = vld [vmem:[%s6174_s2 + $0x38] sm:$0xff]   ;;  %v4234_v28 = vld [vmem:[%s6174_s2 + $0x28] sm:$0xff]   ;;  %v4237_v30 = vld [vmem:[%s6174_s2 + $0x60] sm:$0xff]  }
  0x1b   :  { %543 = vmatpush1.bf16.msra.mxu0 %v4165_v40  ;;  %v4227_v20 = vld [vmem:[%s6173_s1 + $0x12c] ss:$16 sps:$4 sm:$0xff]   ;;  %v4225_v21 = vld [vmem:[%s6173_s1 + $0x128] ss:$16 sps:$4 sm:$0xff]   ;;  %v4239_v32 = vld [vmem:[%s6174_s2 + $0x20] sm:$0xff]  }
  0x1c   :  { %619 = vmatpush1.bf16.msra.mxu1 %v4162_v39  ;;  %544 = vmatprep.subr.bf16.mxu0 %v4166_v41  ;;  %v4232_v24 = vld [vmem:[%s6173_s1 + $0x10c] ss:$16 sps:$4 sm:$0xff]   ;;  %v4230_v29 = vld [vmem:[%s6173_s1 + $0x108] ss:$16 sps:$4 sm:$0xff]   ;;  %v4248_v38 = vld [vmem:[%s6174_s2 + $0x50] sm:$0xff]  }
  0x1d   :  { %620 = vmatprep.subr.bf16.mxu1 %v4170_v42  ;;  %v4238_v31 = vld [vmem:[%s6173_s1 + $0x248] ss:$16 sps:$4 sm:$0x3f]   ;;  %v4242_v34 = vld [vmem:[%s6173_s1 + $0x22c] ss:$16 sps:$4 sm:$0xff]   ;;  %v4249_v40 = vld [vmem:[%s6174_s2 + $0x10] sm:$0xff]  }
  0x1e   :  { %v4243_v33 = vld [vmem:[%s6174_s2 + $0x58] sm:$0xff]   ;;  %v525_v35 = vsel %vm517_vm0, %v4238_v31, 0  ;;  %v4250_v42 = vld [vmem:[%s6174_s2 + $0x48] sm:$0xff]  }
  0x1f   :  { %545 = vmatpush1.bf16.msra.mxu0 %v4171_v43  ;;  %v4244_v36 = vld [vmem:[%s6174_s2 + $0x18] sm:$0xff]   ;;  %v4252_v43 = vld [vmem:[%s6174_s2 + $0x90] sm:$0x3f]  }
  0x20   :  { %621 = vmatpush1.bf16.msra.mxu1 %v4168_v44  ;;  %546 = vmatprep.subr.bf16.mxu0 %v4172_v45  ;;  %v4240_v37 = vld [vmem:[%s6173_s1 + $0x228] ss:$16 sps:$4 sm:$0xff]   ;;  %v4247_v39 = vld [vmem:[%s6173_s1 + $0x20c] ss:$16 sps:$4 sm:$0xff]   ;;  %v4253_v45 = vld [vmem:[%s6174_s2 + $0x40] sm:$0xff]  }
  0x21   :  { %622 = vmatprep.subr.bf16.mxu1 %v4176_v46  ;;  %v4245_v41 = vld [vmem:[%s6173_s1 + $0x208] ss:$16 sps:$4 sm:$0xff]   ;;  %v4747_v46 = vmov 0.0  }
  0x22   :  { %v4251_v44 = vld [vmem:[%s6174_s2 + $0x8] sm:$0xff]  }
  0x23   :  { %547 = vmatpush2.bf16.msra.mxu0 %v4177_v48  ;;  %v4254_v48 = vld [vmem:[%s6174_s2] sm:$0xff]  }
  0x24   :  { %623 = vmatpush1.bf16.msra.mxu1 %v4174_v47  ;;  %548 = vmatprep.subr.bf16.mxu0 %v4178_v49  ;;  %v853_v47 = vsel %vm517_vm0, %v4252_v43, 0  ;;  %v4255_v49 = vld [vmem:[%s6174_s2 + $0x88] sm:$0xff]  }
  0x25   :  { %624 = vmatprep.subr.bf16.mxu1 %v4182_v50  ;;  %v4256_v50 = vld [vmem:[%s6174_s2 + $0x80] sm:$0xff]  }
  0x27   :  { %549 = vmatpush2.bf16.msra.mxu0 %v4183_v51 }
  0x28   :  { %625 = vmatpush1.bf16.msra.mxu1 %v4180_v52  ;;  %550 = vmatprep.subr.bf16.mxu0 %v4184_v53 }
  0x29   :  { %626 = vmatprep.subr.bf16.mxu1 %v4188_v54 }
  0x2b   :  { %551 = vmatpush2.bf16.msra.mxu0 %v4189_v56 }
  0x2c   :  { %627 = vmatpush1.bf16.msra.mxu1 %v4186_v55  ;;  %552 = vmatprep.subr.bf16.mxu0 %v4190_v57 }
  0x2d   :  { %628 = vmatprep.subr.bf16.mxu1 %v4194_v58 }
  0x2f   :  { %553 = vmatpush2.bf16.msra.mxu0 %v4195_v60 }
  0x30   :  { %629 = vmatpush2.bf16.msra.mxu1 %v4192_v59  ;;  %554 = vmatprep.subr.bf16.mxu0 %v4196_v61 }
  0x31   :  { %630 = vmatprep.subr.bf16.mxu1 %v4200_v62 }
  0x33   :  { %555 = vmatpush2.bf16.msra.mxu0 %v4201_v0 }
  0x34   :  { %631 = vmatpush2.bf16.msra.mxu1 %v4198_v63  ;;  %556 = vmatprep.subr.bf16.mxu0 %v4202_v1 }
  0x35   :  { %632 = vmatprep.subr.bf16.mxu1 %v4206_v3 }
  0x37   :  { %557 = vmatpush2.bf16.msra.mxu0 %v4207_v5 }
  0x38   :  { %633 = vmatpush2.bf16.msra.mxu1 %v4204_v4  ;;  %558 = vmatprep.subr.bf16.mxu0 %v4208_v6 }
  0x39   :  { %634 = vmatprep.subr.bf16.mxu1 %v4212_v7 }
  0x3b   :  { %559 = vmatpush2.bf16.msra.mxu0 %v4213_v8 }
  0x3c   :  { %635 = vmatpush2.bf16.msra.mxu1 %v4210_v9  ;;  %560 = vmatprep.subr.bf16.mxu0 %v4214_v10 }
  0x3d   :  { %636 = vmatprep.subr.bf16.mxu1 %v4218_v11 }
  0x3f   :  { %561 = vmatpush2.bf16.msra.mxu0 %v4219_v14 }
  0x40   :  { %637 = vmatpush2.bf16.msra.mxu1 %v4216_v12  ;;  %4059 = vmatprep.subr.bf16.mxu0 %v4223_v15 }
  0x41   :  { %638 = vmatprep.subr.bf16.mxu1 %v4222_v16 }
  0x42   :  { %563 = vmatmul.mubr.bf16.vlgmr.msra.gmra.mxu0 %v4850_v22 }
  0x43   :  { %4060 = vmatpush3.bf16.msra.mxu0 %v4224_v18  ;;  %887 = vmatprep.mubr.bf16.mxu0 %v4862_v27  ;;  %v4235_v27 = vld [vmem:[%s6173_s1 + $0x24c] ss:$16 sps:$4 sm:$0x3f]  }
  0x44   :  { %639 = vmatpush2.bf16.msra.mxu1 %v4220_v17  ;;  %4061 = vmatprep.subr.bf16.mxu0 %v4228_v19 }
  0x45   :  { %640 = vmatprep.subr.bf16.mxu1 %v4227_v20 }
  0x47   :  { %4062 = vmatpush3.bf16.msra.mxu0 %v4229_v23 }
  0x48   :  { %641 = vmatpush2.bf16.msra.mxu1 %v4225_v21  ;;  %4063 = vmatprep.subr.bf16.mxu0 %v4233_v26 }
  0x49   :  { %642 = vmatprep.subr.bf16.mxu1 %v4232_v24 }
  0x4b   :  { %4064 = vmatpush3.bf16.msra.mxu0 %v4234_v28 }
  0x4c   :  { %643 = vmatpush2.bf16.msra.mxu1 %v4230_v29  ;;  %4065 = vmatprep.subr.bf16.mxu0 %v4237_v30 }
  0x4d   :  { %3711 = vmatprep.subr.msk.bf16.mxu1 %vm517_vm0, %v4235_v27 }
  0x4f   :  { %645 = vmatmul.mubr.bf16.vlgmr.msra.gmra.mxu1 %v4850_v22  ;;  %4066 = vmatpush3.bf16.msra.mxu0 %v4239_v32 }
  0x50   :  { %664 = vmatpush1.bf16.msra.mxu1 %v525_v35  ;;  %4067 = vmatprep.subr.bf16.mxu0 %v4243_v33 }
  0x51   :  { %665 = vmatprep.subr.bf16.mxu1 %v4242_v34  ;;  %685 = vmatprep.mubr.bf16.mxu1 %v4745_v2 }
  0x53   :  { %4068 = vmatpush3.bf16.msra.mxu0 %v4244_v36 }
  0x54   :  { %666 = vmatpush1.bf16.msra.mxu1 %v4240_v37  ;;  %4069 = vmatprep.subr.bf16.mxu0 %v4248_v38 }
  0x55   :  { %667 = vmatprep.subr.bf16.mxu1 %v4247_v39 }
  0x57   :  { %4070 = vmatpush3.bf16.msra.mxu0 %v4249_v40 }
  0x58   :  { %668 = vmatpush1.bf16.msra.mxu1 %v4245_v41  ;;  %4071 = vmatprep.subr.bf16.mxu0 %v4250_v42 }
  0x59   :  { %4107 = vmatprep.subr.bf16.mxu1 %v4747_v46 }
  0x5b   :  { %3712 = vmatmul.mubr.msk.bf16.vlgmr.msra.gmra.mxu1 %vm513_vm1, %v4857_v25  ;;  %4072 = vmatpush3.bf16.msra.mxu0 %v4251_v44 }
  0x5c   :  { %4108 = vmatpush3.bf16.msra.mxu1 %v853_v47  ;;  %4073 = vmatprep.subr.bf16.mxu0 %v4253_v45 }
  0x5d   :  { %4109 = vmatprep.subr.bf16.mxu1 %v4747_v46  ;;  %4113 = vmatprep.mubr.msk.bf16.mxu1 %vm4748_vm2, %v4747_v46 }
  0x5f   :  { %4074 = vmatpush3.bf16.msra.mxu0 %v4254_v48 }
  0x60   :  { %4110 = vmatpush3.bf16.msra.mxu1 %v4255_v49 }
  0x61   :  { %4111 = vmatprep.subr.bf16.mxu1 %v4747_v46 }
  0x62   :  { %888 = vmatmul.mubr.bf16.vlgmr.msra.gmra.mxu0 %v4850_v22 }
  0x64   :  { %4112 = vmatpush3.bf16.msra.mxu1 %v4256_v50 }
  0x67   :  { %4114 = vmatmul.mubr.msk.bf16.vlgmr.msra.gmra.mxu1 %vm513_vm1, %v4857_v25 }
  0x68   :  { %1020 = vmatprep.mubr.bf16.mxu1 %v4745_v2 }
  0x69   :  { %14 = vsyncpa [#allocation3], 0  ;;  %v3713_v8 = vld [vmem:[%s6175_s3] ss:$0 sm:$0xff]  ;;  %vm935_vm3 = vcmask 115712   ;;  %vm972_vm4 = vcmask 1046528  }
  0x6a   :  { %v4257_v28 = vld [vmem:[%s6176_s4] ss:$16 sps:$4 sm:$0xff]   ;;  %v4259_v29 = vld [vmem:[%s6176_s4 + $0x4] ss:$16 sps:$4 sm:$0xff]   ;;  %vm973_vm5 = vcmask 1047552   ;;  %v4749_v30 = vmov 65535  }
  0x6b   :  { %v974_v27 = vsel %vm972_vm4, 4294967295, %v4749_v30  ;;  %v4262_v34 = vld [vmem:[%s6176_s4 + $0xc] ss:$16 sps:$4 sm:$0xff]   ;;  %v4278_v36 = vld [vmem:[%s6177_s5 + $0x508] ss:$28 sps:$4 sm:$0xff]   ;;  %vm968_vm6 = vcmask 121856  }
  0x6c   :  { %v975_v31 = vsel %vm973_vm5, %v974_v27, 0  ;;  %v4280_v37 = vld [vmem:[%s6177_s5 + $0x50c] ss:$28 sps:$4 sm:$0xff]   ;;  %v4286_v39 = vld [vmem:[%s6177_s5 + $0x4d4] ss:$28 sps:$4 sm:$0xff]   ;;  %vm2435_vm7 = vcmask 785408  }
  0x6d   :  { %v980_v32 = vand.u32 %v4259_v29, %v975_v31  ;;  %v977_v33 = vand.u32 %v4257_v28, %v975_v31  ;;  %v986_v35 = vand.u32 %v4262_v34, %v975_v31  ;;  %2480 = vmatprep.subr.bf16.mxu0 %v4280_v37  ;;  %v4284_v38 = vld [vmem:[%s6177_s5 + $0x4d0] ss:$28 sps:$4 sm:$0xff]   ;;  %v4290_v40 = vld [vmem:[%s6177_s5 + $0x498] ss:$28 sps:$4 sm:$0xff]   ;;  %v4296_v42 = vld [vmem:[%s6177_s5 + $0x460] ss:$28 sps:$4 sm:$0xff]  }
  0x6e   :  { %2481 = vmatpush1.bf16.msra.mxu0 %v4278_v36  ;;  %v4292_v41 = vld [vmem:[%s6177_s5 + $0x49c] ss:$28 sps:$4 sm:$0xff]   ;;  %v4298_v43 = vld [vmem:[%s6177_s5 + $0x464] ss:$28 sps:$4 sm:$0xff]   ;;  %v4304_v45 = vld [vmem:[%s6177_s5 + $0x42c] ss:$28 sps:$4 sm:$0xff]  }
  0x6f   :  { %1002 = vmatprep.subr.bf16.mxu1 %v980_v32  ;;  %2482 = vmatprep.subr.bf16.mxu0 %v4286_v39  ;;  %v4302_v44 = vld [vmem:[%s6177_s5 + $0x428] ss:$28 sps:$4 sm:$0xff]   ;;  %v4308_v46 = vld [vmem:[%s6177_s5 + $0x3f0] ss:$28 sps:$4 sm:$0xff]   ;;  %v4314_v48 = vld [vmem:[%s6177_s5 + $0x3b8] ss:$28 sps:$4 sm:$0xff]  }
  0x70   :  { %1003 = vmatpush1.bf16.msra.mxu1 %v977_v33  ;;  %v4310_v47 = vld [vmem:[%s6177_s5 + $0x3f4] ss:$28 sps:$4 sm:$0xff]   ;;  %v4316_v49 = vld [vmem:[%s6177_s5 + $0x3bc] ss:$28 sps:$4 sm:$0xff]   ;;  %v4319_v29 = vld [vmem:[%s6177_s5 + $0x2a4] ss:$28 sps:$4 sm:$0xff]  }
  0x71   :  { %1043 = vmatprep.subr.bf16.mxu1 %v986_v35  ;;  %v4320_v50 = vld [vmem:[%s6177_s5 + $0x380] ss:$28 sps:$4 sm:$0xff]   ;;  %v4311_v28 = vld [vmem:[%s6177_s5 + $0x2d8] ss:$28 sps:$4 sm:$0xff]   ;;  %v4325_v27 = vld [vmem:[%s6177_s5 + $0x26c] ss:$28 sps:$4 sm:$0xff]  }
  0x72   :  { %2483 = vmatpush1.bf16.msra.mxu0 %v4284_v38  ;;  %v4317_v30 = vld [vmem:[%s6177_s5 + $0x2a0] ss:$28 sps:$4 sm:$0xff]   ;;  %v4331_v32 = vld [vmem:[%s6177_s5 + $0x234] ss:$28 sps:$4 sm:$0xff]   ;;  %vm3429_vm15 = vcmask 523264   ;;  %vm3614_vm2 = vcmask 1041408  }
  0x73   :  { %2484 = vmatprep.subr.bf16.mxu0 %v4292_v41  ;;  %v4329_v33 = vld [vmem:[%s6177_s5 + $0x230] ss:$28 sps:$4 sm:$0xff]   ;;  %v4337_v34 = vld [vmem:[%s6177_s5 + $0x1fc] ss:$28 sps:$4 sm:$0xff]   ;;  %v4343_v36 = vld [vmem:[%s6177_s5 + $0x1c4] ss:$28 sps:$4 sm:$0xff]  }
  0x74   :  { %v4335_v35 = vld [vmem:[%s6177_s5 + $0x1f8] ss:$28 sps:$4 sm:$0xff]   ;;  %v4341_v38 = vld [vmem:[%s6177_s5 + $0x1c0] ss:$28 sps:$4 sm:$0xff]   ;;  %v4344_v39 = vld [vmem:[%s6177_s5 + $0x5b0] ss:$28 sps:$4 sm:$0xff]  }
  0x75   :  { %v4346_v37 = vld [vmem:[%s6177_s5 + $0x5b4] ss:$28 sps:$4 sm:$0xff]  }
  0x76   :  { %2485 = vmatpush1.bf16.msra.mxu0 %v4290_v40  ;;  %v4349_v40 = vld [vmem:[%s6177_s5 + $0x57c] ss:$28 sps:$4 sm:$0xff]   ;;  %v4352_v41 = vld [vmem:[%s6177_s5 + $0x514] ss:$28 sps:$4 sm:$0xff]  }
  0x77   :  { %2486 = vmatprep.subr.bf16.mxu0 %v4298_v43  ;;  %v4355_v43 = vld [vmem:[%s6177_s5 + $0x544] ss:$28 sps:$4 sm:$0xff]  }
  0x7a   :  { %2487 = vmatpush1.bf16.msra.mxu0 %v4296_v42  ;;  %v4347_v42 = vld [vmem:[%s6177_s5 + $0x578] ss:$28 sps:$4 sm:$0xff]  }
  0x7b   :  { %2488 = vmatprep.subr.bf16.mxu0 %v4304_v45  ;;  %v4361_v45 = vld [vmem:[%s6177_s5 + $0x194] ss:$28 sps:$4 sm:$0xff]  }
  0x7e   :  { %2489 = vmatpush1.bf16.msra.mxu0 %v4302_v44  ;;  %v4353_v44 = vld [vmem:[%s6177_s5 + $0x540] ss:$28 sps:$4 sm:$0xff]  }
  0x7f   :  { %2490 = vmatprep.subr.bf16.mxu0 %v4310_v47 }
  0x82   :  { %2491 = vmatpush1.bf16.msra.mxu0 %v4308_v46 }
  0x83   :  { %2492 = vmatprep.subr.bf16.mxu0 %v4316_v49 }
  0x86   :  { %2493 = vmatpush1.bf16.msra.mxu0 %v4314_v48 }
  0xcf   :  { %v605_v51 = vpop.f32.mrf.mxu1 }
  0xd1   :  { %v607_v52 = vpop.f32.mrf.mxu1 }
  0xd3   :  { %v609_v53 = vpop.f32.mrf.mxu1 }
  0xd4   :  { %v4328_v53 = vld [vmem:[%s6177_s5 + $0x65c] ss:$28 sps:$4 sm:$0xff]  }
  0xd5   :  { %v610_v54 = vpop.f32.mrf.mxu1 }
  0xd6   :  { %v4332_v54 = vld [vmem:[%s6177_s5 + $0x620] ss:$28 sps:$4 sm:$0xff]  }
 0x102   :  { %v564_v55 = vpop.f32.mrf.mxu0 }
 0x103   :  { %v5121_v56 = vadd.f32 %v605_v51, %v564_v55  ;;  %v4322_v51 = vld [vmem:[%s6177_s5 + $0x384] ss:$28 sps:$4 sm:$0xff]  }
 0x104   :  { %v566_v57 = vpop.f32.mrf.mxu0  ;;  %2494 = vmatprep.subr.bf16.mxu0 %v4322_v51  ;;  %v4334_v55 = vld [vmem:[%s6177_s5 + $0x624] ss:$28 sps:$4 sm:$0xff]  }
 0x105   :  { %v5123_v58 = vadd.f32 %v607_v52, %v566_v57  ;;  %2495 = vmatpush1.bf16.msra.mxu0 %v4320_v50  ;;  %v4326_v52 = vld [vmem:[%s6177_s5 + $0x658] ss:$28 sps:$4 sm:$0xff]   ;;  %v4338_v57 = vld [vmem:[%s6177_s5 + $0x5e8] ss:$28 sps:$4 sm:$0xff]  }
 0x106   :  { %v568_v59 = vpop.f32.mrf.mxu0  ;;  %2500 = vmatprep.subr.bf16.mxu0 %v4328_v53 }
 0x107   :  { %v4340_v59 = vld [vmem:[%s6177_s5 + $0x5ec] ss:$28 sps:$4 sm:$0xff]  }
 0x108   :  { %v569_v60 = vpop.f32.mrf.mxu0 }
 0x109   :  { %2501 = vmatpush2.bf16.msra.mxu0 %v4326_v52  ;;  %v4350_v52 = vld [vmem:[%s6177_s5 + $0x510] ss:$28 sps:$4 sm:$0xff]  }
 0x10a   :  { %2502 = vmatprep.subr.bf16.mxu0 %v4334_v55  ;;  %v4358_v55 = vld [vmem:[%s6177_s5 + $0x4dc] ss:$28 sps:$4 sm:$0xff]  }
 0x10d   :  { %2503 = vmatpush2.bf16.msra.mxu0 %v4332_v54 }
 0x10e   :  { %2504 = vmatprep.subr.bf16.mxu0 %v4340_v59 }
 0x10f   :  { %v646_v22 = vpop.f32.mrf.mxu1 }
 0x111   :  { %v648_v61 = vpop.f32.mrf.mxu1  ;;  %2505 = vmatpush2.bf16.msra.mxu0 %v4338_v57 }
 0x112   :  { %2506 = vmatprep.subr.bf16.mxu0 %v4346_v37  ;;  %v4410_v37 = vld [vmem:[%s6177_s5 + $0x5f0] ss:$28 sps:$4 sm:$0xff]  }
 0x113   :  { %v650_v62 = vpop.f32.mrf.mxu1 }
 0x115   :  { %v651_v63 = vpop.f32.mrf.mxu1  ;;  %2507 = vmatpush2.bf16.msra.mxu0 %v4344_v39  ;;  %v4418_v39 = vld [vmem:[%s6177_s5 + $0x5bc] ss:$28 sps:$4 sm:$0xff]  }
 0x116   :  { %2508 = vmatprep.subr.bf16.mxu0 %v4349_v40  ;;  %v4413_v40 = vld [vmem:[%s6177_s5 + $0x318] ss:$28 sps:$4 sm:$0xff]  }
 0x119   :  { %2509 = vmatpush2.bf16.msra.mxu0 %v4347_v42  ;;  %v4421_v42 = vld [vmem:[%s6177_s5 + $0x2e4] ss:$28 sps:$4 sm:$0xff]  }
 0x11a   :  { %2510 = vmatprep.subr.bf16.mxu0 %v4355_v43  ;;  %v4424_v43 = vld [vmem:[%s6177_s5 + $0x584] ss:$28 sps:$4 sm:$0xff]  }
 0x11b   :  { %v687_v25 = vpop.f32.mrf.mxu1 }
 0x11c   :  { %v5125_v0 = vadd.f32 %v687_v25, %v646_v22  ;;  %v4260_v22 = vld [vmem:[%s6176_s4 + $0x8] ss:$16 sps:$4 sm:$0xff]  }
 0x11d   :  { %v689_v1 = vpop.f32.mrf.mxu1  ;;  %v983_v63 = vand.u32 %v4260_v22, %v975_v31  ;;  %v4323_v31 = vld [vmem:[%s6177_s5 + $0x268] ss:$28 sps:$4 sm:$0xff]   ;;  %2511 = vmatpush2.bf16.msra.mxu0 %v4353_v44  ;;  %v4419_v44 = vld [vmem:[%s6177_s5 + $0x2e0] ss:$28 sps:$4 sm:$0xff]  }
 0x11e   :  { %v5127_v3 = vadd.f32 %v689_v1, %v648_v61  ;;  %v4265_v1 = vld [vmem:[%s6177_s5 + $0x18c] ss:$28 sps:$4 sm:$0xff]   ;;  %2521 = vmatprep.subr.bf16.mxu0 %v4361_v45  ;;  %v4422_v45 = vld [vmem:[%s6177_s5 + $0x580] ss:$28 sps:$4 sm:$0xff]  }
 0x11f   :  { %v691_v4 = vpop.f32.mrf.mxu1 }
 0x120   :  { %v4263_v4 = vld [vmem:[%s6177_s5 + $0x188] ss:$28 sps:$4 sm:$0xff]  }
 0x121   :  { %v692_v5 = vpop.f32.mrf.mxu1 }
 0x122   :  { %v4075_v6 = vpop.f32.mrf.mxu0  ;;  %v4268_v5 = vld [vmem:[%s6177_s5 + $0x154] ss:$28 sps:$4 sm:$0xff]  }
 0x124   :  { %v4076_v7 = vpop.f32.mrf.mxu0 }
 0x125   :  { %v4077_v9 = vadd.f32 %v4076_v7, %v4075_v6  ;;  %v4266_v6 = vld [vmem:[%s6177_s5 + $0x150] ss:$28 sps:$4 sm:$0xff]   ;;  %v4271_v7 = vld [vmem:[%s6177_s5 + $0x11c] ss:$28 sps:$4 sm:$0xff]  }
 0x126   :  { %v4078_v10 = vpop.f32.mrf.mxu0 }
 0x127   :  { %v890_v11 = vadd.f32 %v4077_v9, %v3713_v8  ;;  %v929_v12 = vpop.f32.mrf.mxu1  ;;  %v4269_v8 = vld [vmem:[%s6177_s5 + $0x118] ss:$28 sps:$4 sm:$0xff]   ;;  %v4274_v9 = vld [vmem:[%s6177_s5 + $0xe4] ss:$28 sps:$4 sm:$0xff]  }
 0x128   :  { %v4079_v14 = vpop.f32.mrf.mxu0  ;;  %v4272_v10 = vld [vmem:[%s6177_s5 + $0xe0] ss:$28 sps:$4 sm:$0xff]  }
 0x129   :  { %v930_v15 = vadd.f32 %v929_v12, %v890_v11  ;;  %v4115_v16 = vpop.f32.mrf.mxu1  ;;  %v4277_v11 = vld [vmem:[%s6177_s5 + $0xac] ss:$28 sps:$4 sm:$0xff]   ;;  %v4283_v14 = vld [vmem:[%s6177_s5 + $0x74] ss:$28 sps:$4 sm:$0xff]  }
 0x12a   :  { %v4275_v12 = vld [vmem:[%s6177_s5 + $0xa8] ss:$28 sps:$4 sm:$0xff]   ;;  %v4289_v16 = vld [vmem:[%s6177_s5 + $0x3c] ss:$28 sps:$4 sm:$0xff]  }
 0x12b   :  { %v932_v17 = vpop.f32.mrf.mxu1  ;;  %v936_v18 = vsel %vm935_vm3, %v930_v15, -inf }
 0x12c   :  { %937 = vmax.xlane.f32.xlu0 %v936_v18  ;;  %v4287_v17 = vld [vmem:[%s6177_s5 + $0x38] ss:$28 sps:$4 sm:$0xff]   ;;  %v4295_v18 = vld [vmem:[%s6177_s5 + $0x4] ss:$28 sps:$4 sm:$0xff]  }
 0x12d   :  { %v4116_v19 = vpop.f32.mrf.mxu1 }
 0x12e   :  { %v4293_v19 = vld [vmem:[%s6177_s5] ss:$28 sps:$4 sm:$0xff]  }
 0x1b5   :  { %v938_v20 = vpop.xlane.xlu0 %937 }
 0x1b6   :  { %v939_v21 = vsub.f32 %v930_v15, %v938_v20  ;;  %v4281_v15 = vld [vmem:[%s6177_s5 + $0x70] ss:$28 sps:$4 sm:$0xff]  }
 0x1b7   :  { %v4301_v20 = vld [vmem:[%s6177_s5 + $0x34c] ss:$28 sps:$4 sm:$0xff]  }
 0x1b8   :  { %v940_v23 = vmul.f32 1.442695, %v939_v21  ;;  %v4299_v21 = vld [vmem:[%s6177_s5 + $0x348] ss:$28 sps:$4 sm:$0xff]  }
 0x1ba   :  { %4719 = vpow2.f32 %v940_v23  ;;  %v4307_v23 = vld [vmem:[%s6177_s5 + $0x314] ss:$28 sps:$4 sm:$0xff]  }
 0x1c7   :  { %v5132_v24 = vpop.eup %4719 }
 0x1c8   :  { %v942_v26 = vsel %vm935_vm3, %v5132_v24, 0.0  ;;  %vm3615_vm3 = vcmask 748546  }
 0x1c9   :  { %943 = vadd.xlane.f32.xlu0 %v942_v26  ;;  %v4313_v26 = vld [vmem:[%s6177_s5 + $0x2dc] ss:$28 sps:$4 sm:$0xff]   ;;  %vm3616_vm4 = vmor %vm3615_vm3, %vm3614_vm2 }
 0x252   :  { %v944_v60 = vpop.xlane.xlu0 %943 }
 0x253   :  { %4721 = vrcp.f32 %v944_v60  ;;  %v4364_v60 = vld [vmem:[%s6177_s5 + $0x4a4] ss:$28 sps:$4 sm:$0xff]  }
 0x260   :  { %v4722_v61 = vpop.eup %4721 }
 0x261   :  { %v946_v62 = vmul.f32 %v4722_v61, %v5132_v24  ;;  %v4305_v24 = vld [vmem:[%s6177_s5 + $0x310] ss:$28 sps:$4 sm:$0xff]  }
 0x263   :  { %v947_v25 = vpack.c.bf16 %v946_v62, %v946_v62 }
 0x265   :  { %3738 = vmatmul.mubr.msk.bf16.vlgmr.msra.gmra.mxu1 %vm968_vm6, %v947_v25 }
 0x266   :  { %1044 = vmatpush1.bf16.msra.mxu1 %v983_v63  ;;  %1061 = vmatprep.mubr.bf16.mxu1 %v4745_v2  ;;  %v4359_v63 = vld [vmem:[%s6177_s5 + $0x190] ss:$28 sps:$4 sm:$0xff]  }
 0x267   :  { %2439 = vmatprep.subr.bf16.mxu1 %v4265_v1 }
 0x26d   :  { %3739 = vmatmul.mubr.msk.bf16.vlgmr.msra.gmra.mxu1 %vm968_vm6, %v947_v25 }
 0x26e   :  { %2440 = vmatpush1.bf16.msra.mxu1 %v4263_v4  ;;  %v4370_v4 = vld [vmem:[%s6177_s5 + $0x46c] ss:$28 sps:$4 sm:$0xff]  }
 0x26f   :  { %2441 = vmatprep.subr.bf16.mxu1 %v4268_v5  ;;  %v4365_v5 = vld [vmem:[%s6177_s5 + $0x158] ss:$28 sps:$4 sm:$0xff]  }
 0x272   :  { %2442 = vmatpush1.bf16.msra.mxu1 %v4266_v6  ;;  %v4368_v6 = vld [vmem:[%s6177_s5 + $0x468] ss:$28 sps:$4 sm:$0xff]  }
 0x273   :  { %2443 = vmatprep.subr.bf16.mxu1 %v4271_v7  ;;  %v4373_v7 = vld [vmem:[%s6177_s5 + $0x124] ss:$28 sps:$4 sm:$0xff]  }
 0x276   :  { %2444 = vmatpush1.bf16.msra.mxu1 %v4269_v8  ;;  %v4376_v8 = vld [vmem:[%s6177_s5 + $0x434] ss:$28 sps:$4 sm:$0xff]  }
 0x277   :  { %2445 = vmatprep.subr.bf16.mxu1 %v4274_v9  ;;  %v4371_v9 = vld [vmem:[%s6177_s5 + $0x120] ss:$28 sps:$4 sm:$0xff]  }
 0x27a   :  { %2446 = vmatpush1.bf16.msra.mxu1 %v4272_v10  ;;  %v4374_v10 = vld [vmem:[%s6177_s5 + $0x430] ss:$28 sps:$4 sm:$0xff]  }
 0x27b   :  { %2447 = vmatprep.subr.bf16.mxu1 %v4277_v11  ;;  %v4379_v11 = vld [vmem:[%s6177_s5 + $0xec] ss:$28 sps:$4 sm:$0xff]  }
 0x27e   :  { %2448 = vmatpush1.bf16.msra.mxu1 %v4275_v12  ;;  %v4382_v12 = vld [vmem:[%s6177_s5 + $0x3fc] ss:$28 sps:$4 sm:$0xff]  }
 0x27f   :  { %2449 = vmatprep.subr.bf16.mxu1 %v4283_v14  ;;  %v4377_v14 = vld [vmem:[%s6177_s5 + $0xe8] ss:$28 sps:$4 sm:$0xff]  }
 0x282   :  { %2450 = vmatpush1.bf16.msra.mxu1 %v4281_v15  ;;  %v4380_v15 = vld [vmem:[%s6177_s5 + $0x3f8] ss:$28 sps:$4 sm:$0xff]  }
 0x283   :  { %2451 = vmatprep.subr.bf16.mxu1 %v4289_v16  ;;  %v4385_v16 = vld [vmem:[%s6177_s5 + $0xb4] ss:$28 sps:$4 sm:$0xff]  }
 0x286   :  { %2452 = vmatpush1.bf16.msra.mxu1 %v4287_v17  ;;  %v4388_v17 = vld [vmem:[%s6177_s5 + $0x3c4] ss:$28 sps:$4 sm:$0xff]  }
 0x287   :  { %2453 = vmatprep.subr.bf16.mxu1 %v4295_v18  ;;  %v4383_v18 = vld [vmem:[%s6177_s5 + $0xb0] ss:$28 sps:$4 sm:$0xff]  }
 0x28a   :  { %2454 = vmatpush1.bf16.msra.mxu1 %v4293_v19  ;;  %v4386_v19 = vld [vmem:[%s6177_s5 + $0x3c0] ss:$28 sps:$4 sm:$0xff]  }
 0x28b   :  { %2455 = vmatprep.subr.bf16.mxu1 %v4301_v20  ;;  %v4391_v20 = vld [vmem:[%s6177_s5 + $0x7c] ss:$28 sps:$4 sm:$0xff]  }
 0x28e   :  { %2456 = vmatpush2.bf16.msra.mxu1 %v4299_v21  ;;  %v4394_v21 = vld [vmem:[%s6177_s5 + $0x38c] ss:$28 sps:$4 sm:$0xff]  }
 0x28f   :  { %2457 = vmatprep.subr.bf16.mxu1 %v4307_v23  ;;  %v4389_v23 = vld [vmem:[%s6177_s5 + $0x78] ss:$28 sps:$4 sm:$0xff]  }
 0x292   :  { %2458 = vmatpush2.bf16.msra.mxu1 %v4305_v24  ;;  %v4392_v24 = vld [vmem:[%s6177_s5 + $0x388] ss:$28 sps:$4 sm:$0xff]  }
 0x293   :  { %2459 = vmatprep.subr.bf16.mxu1 %v4313_v26  ;;  %v4397_v26 = vld [vmem:[%s6177_s5 + $0x44] ss:$28 sps:$4 sm:$0xff]  }
 0x296   :  { %2460 = vmatpush2.bf16.msra.mxu1 %v4311_v28  ;;  %v4400_v28 = vld [vmem:[%s6177_s5 + $0x664] ss:$28 sps:$4 sm:$0xff]  }
 0x297   :  { %2461 = vmatprep.subr.bf16.mxu1 %v4319_v29  ;;  %v4395_v29 = vld [vmem:[%s6177_s5 + $0x40] ss:$28 sps:$4 sm:$0xff]  }
 0x29a   :  { %2462 = vmatpush2.bf16.msra.mxu1 %v4317_v30  ;;  %v4398_v30 = vld [vmem:[%s6177_s5 + $0x660] ss:$28 sps:$4 sm:$0xff]  }
 0x29b   :  { %2463 = vmatprep.subr.bf16.mxu1 %v4325_v27  ;;  %v4403_v27 = vld [vmem:[%s6177_s5 + $0xc] ss:$28 sps:$4 sm:$0xff]  }
 0x29e   :  { %2464 = vmatpush2.bf16.msra.mxu1 %v4323_v31  ;;  %v4406_v31 = vld [vmem:[%s6177_s5 + $0x62c] ss:$28 sps:$4 sm:$0xff]  }
 0x29f   :  { %2465 = vmatprep.subr.bf16.mxu1 %v4331_v32  ;;  %v4401_v32 = vld [vmem:[%s6177_s5 + $0x8] ss:$28 sps:$4 sm:$0xff]  }
 0x2a2   :  { %2466 = vmatpush2.bf16.msra.mxu1 %v4329_v33  ;;  %v4404_v33 = vld [vmem:[%s6177_s5 + $0x628] ss:$28 sps:$4 sm:$0xff]  }
 0x2a3   :  { %2467 = vmatprep.subr.bf16.mxu1 %v4337_v34  ;;  %v4409_v34 = vld [vmem:[%s6177_s5 + $0x354] ss:$28 sps:$4 sm:$0xff]  }
 0x2a6   :  { %2468 = vmatpush2.bf16.msra.mxu1 %v4335_v35  ;;  %v4412_v35 = vld [vmem:[%s6177_s5 + $0x5f4] ss:$28 sps:$4 sm:$0xff]  }
 0x2a7   :  { %2469 = vmatprep.subr.bf16.mxu1 %v4343_v36  ;;  %v4407_v36 = vld [vmem:[%s6177_s5 + $0x350] ss:$28 sps:$4 sm:$0xff]  }
 0x2aa   :  { %2470 = vmatpush2.bf16.msra.mxu1 %v4341_v38  ;;  %v4415_v38 = vld [vmem:[%s6177_s5 + $0x31c] ss:$28 sps:$4 sm:$0xff]  }
 0x2ab   :  { %2562 = vmatprep.subr.bf16.mxu1 %v4352_v41  ;;  %v4416_v41 = vld [vmem:[%s6177_s5 + $0x5b8] ss:$28 sps:$4 sm:$0xff]  }
 0x325   :  { %v1022_v46 = vpop.f32.mrf.mxu1 }
 0x326   :  { %v1070_v47 = vmul.f32 %v1022_v46, %v5121_v56  ;;  %v4427_v46 = vld [vmem:[%s6177_s5 + $0x2ac] ss:$28 sps:$4 sm:$0xff]  }
 0x327   :  { %v1024_v48 = vpop.f32.mrf.mxu1 }
 0x328   :  { %v1071_v49 = vmul.f32 %v1024_v48, %v5123_v58  ;;  %v5342_v53 = vpack.c.bf16 %v1070_v47, %v1070_v47  ;;  %v4356_v58 = vld [vmem:[%s6177_s5 + $0x4d8] ss:$28 sps:$4 sm:$0xff]   ;;  %v4430_v47 = vld [vmem:[%s6177_s5 + $0x54c] ss:$28 sps:$4 sm:$0xff]  }
 0x329   :  { %v1026_v50 = vpop.f32.mrf.mxu1  ;;  %v4425_v48 = vld [vmem:[%s6177_s5 + $0x2a8] ss:$28 sps:$4 sm:$0xff]  }
 0x32a   :  { %v5337_v51 = vpack.c.bf16 %v1071_v49, %v1071_v49  ;;  %v4428_v49 = vld [vmem:[%s6177_s5 + $0x548] ss:$28 sps:$4 sm:$0xff]   ;;  %v4433_v50 = vld [vmem:[%s6177_s5 + $0x274] ss:$28 sps:$4 sm:$0xff]  }
 0x32b   :  { %v1027_v54 = vpop.f32.mrf.mxu1 }
 0x32c   :  { %2471 = vmatprep.mubr.bf16.mxu1 %v5337_v51  ;;  %v4431_v54 = vld [vmem:[%s6177_s5 + $0x270] ss:$28 sps:$4 sm:$0xff]  }
 0x32d   :  { %v1063_v56 = vpop.f32.mrf.mxu1  ;;  %2472 = vmatmul.mubr.bf16.vlgmr.msra.gmra.mxu1 %v5342_v53 }
 0x32e   :  { %2563 = vmatpush1.bf16.msra.mxu1 %v4350_v52  ;;  %v1072_v57 = vmul.f32 %v1063_v56, %v5125_v0  ;;  %v4362_v0 = vld [vmem:[%s6177_s5 + $0x4a0] ss:$28 sps:$4 sm:$0xff]  }
 0x32f   :  { %v1065_v59 = vpop.f32.mrf.mxu1  ;;  %2564 = vmatprep.subr.bf16.mxu1 %v4358_v55  ;;  %v4436_v52 = vld [vmem:[%s6177_s5 + $0x19c] ss:$28 sps:$4 sm:$0xff]  }
 0x330   :  { %v1073_v22 = vmul.f32 %v1065_v59, %v5127_v3  ;;  %v5365_v25 = vpack.c.bf16 %v1072_v57, %v1072_v57  ;;  %v4367_v3 = vld [vmem:[%s6177_s5 + $0x15c] ss:$28 sps:$4 sm:$0xff]  }
 0x331   :  { %v1067_v61 = vpop.f32.mrf.mxu1  ;;  %v4434_v55 = vld [vmem:[%s6177_s5 + $0x198] ss:$28 sps:$4 sm:$0xff]   ;;  %v4440_v59 = vld [vmem:[%s6177_s5 + $0x160] ss:$28 sps:$4 sm:$0xff]  }
 0x332   :  { %v5357_v62 = vpack.c.bf16 %v1073_v22, %v1073_v22  ;;  %2565 = vmatpush1.bf16.msra.mxu1 %v4356_v58  ;;  %v4439_v56 = vld [vmem:[%s6177_s5 + $0x23c] ss:$28 sps:$4 sm:$0xff]   ;;  %v4442_v58 = vld [vmem:[%s6177_s5 + $0x164] ss:$28 sps:$4 sm:$0xff]   ;;  %v4448_v22 = vld [vmem:[%s6177_s5 + $0x12c] ss:$28 sps:$4 sm:$0xff]  }
 0x333   :  { %v1068_v1 = vpop.f32.mrf.mxu1  ;;  %2566 = vmatprep.subr.bf16.mxu1 %v4364_v60  ;;  %v4437_v57 = vld [vmem:[%s6177_s5 + $0x238] ss:$28 sps:$4 sm:$0xff]   ;;  %v4445_v60 = vld [vmem:[%s6177_s5 + $0x204] ss:$28 sps:$4 sm:$0xff]  }
 0x334   :  { %3950 = vmatprep.mubr.msk.bf16.mxu0 %vm2435_vm7, %v5357_v62  ;;  %3951 = vmatprep.mubr.msk.bf16.mxu1 %vm2435_vm7, %v5357_v62  ;;  %v4443_v61 = vld [vmem:[%s6177_s5 + $0x200] ss:$28 sps:$4 sm:$0xff]   ;;  %v4454_v1 = vld [vmem:[%s6177_s5 + $0xf4] ss:$28 sps:$4 sm:$0xff]  }
 0x335   :  { %2513 = vmatmul.mubr.bf16.vlgmr.msra.gmra.mxu0 %v5365_v25 }
 0x336   :  { %2522 = vmatpush1.bf16.msra.mxu0 %v4359_v63  ;;  %2567 = vmatpush1.bf16.msra.mxu1 %v4362_v0  ;;  %v4446_v63 = vld [vmem:[%s6177_s5 + $0x128] ss:$28 sps:$4 sm:$0xff]  }
 0x337   :  { %2553 = vmatprep.mubr.bf16.mxu0 %v5337_v51  ;;  %2523 = vmatprep.subr.bf16.mxu0 %v4367_v3  ;;  %v4451_v0 = vld [vmem:[%s6177_s5 + $0x1cc] ss:$28 sps:$4 sm:$0xff]  }
 0x338   :  { %2568 = vmatprep.subr.bf16.mxu1 %v4370_v4  ;;  %v4449_v3 = vld [vmem:[%s6177_s5 + $0x1c8] ss:$28 sps:$4 sm:$0xff]   ;;  %v4452_v4 = vld [vmem:[%s6177_s5 + $0xf0] ss:$28 sps:$4 sm:$0xff]  }
 0x33a   :  { %2524 = vmatpush1.bf16.msra.mxu0 %v4365_v5  ;;  %2569 = vmatpush1.bf16.msra.mxu1 %v4368_v6  ;;  %v4457_v5 = vld [vmem:[%s6177_s5 + $0xbc] ss:$28 sps:$4 sm:$0xff]  }
 0x33b   :  { %2525 = vmatprep.subr.bf16.mxu0 %v4373_v7  ;;  %2570 = vmatprep.subr.bf16.mxu1 %v4376_v8  ;;  %v4460_v6 = vld [vmem:[%s6177_s5 + $0x51c] ss:$28 sps:$4 sm:$0xff]  }
 0x33c   :  { %v4455_v7 = vld [vmem:[%s6177_s5 + $0xb8] ss:$28 sps:$4 sm:$0xff]  }
 0x33d   :  { %v4458_v8 = vld [vmem:[%s6177_s5 + $0x518] ss:$28 sps:$4 sm:$0xff]  }
 0x33e   :  { %2526 = vmatpush1.bf16.msra.mxu0 %v4371_v9  ;;  %2571 = vmatpush1.bf16.msra.mxu1 %v4374_v10  ;;  %v4463_v9 = vld [vmem:[%s6177_s5 + $0x84] ss:$28 sps:$4 sm:$0xff]  }
 0x33f   :  { %2527 = vmatprep.subr.bf16.mxu0 %v4379_v11  ;;  %2572 = vmatprep.subr.bf16.mxu1 %v4382_v12  ;;  %v4466_v10 = vld [vmem:[%s6177_s5 + $0x4e4] ss:$28 sps:$4 sm:$0xff]  }
 0x340   :  { %v4461_v11 = vld [vmem:[%s6177_s5 + $0x80] ss:$28 sps:$4 sm:$0xff]  }
 0x341   :  { %v4464_v12 = vld [vmem:[%s6177_s5 + $0x4e0] ss:$28 sps:$4 sm:$0xff]  }
 0x342   :  { %2528 = vmatpush1.bf16.msra.mxu0 %v4377_v14  ;;  %2573 = vmatpush1.bf16.msra.mxu1 %v4380_v15  ;;  %v4469_v14 = vld [vmem:[%s6177_s5 + $0x4c] ss:$28 sps:$4 sm:$0xff]  }
 0x343   :  { %2529 = vmatprep.subr.bf16.mxu0 %v4385_v16  ;;  %2574 = vmatprep.subr.bf16.mxu1 %v4388_v17  ;;  %v4472_v15 = vld [vmem:[%s6177_s5 + $0x4ac] ss:$28 sps:$4 sm:$0xff]  }
 0x344   :  { %v4467_v16 = vld [vmem:[%s6177_s5 + $0x48] ss:$28 sps:$4 sm:$0xff]  }
 0x345   :  { %v4470_v17 = vld [vmem:[%s6177_s5 + $0x4a8] ss:$28 sps:$4 sm:$0xff]  }
 0x346   :  { %2530 = vmatpush1.bf16.msra.mxu0 %v4383_v18  ;;  %2575 = vmatpush1.bf16.msra.mxu1 %v4386_v19  ;;  %v4475_v18 = vld [vmem:[%s6177_s5 + $0x14] ss:$28 sps:$4 sm:$0xff]  }
 0x347   :  { %2531 = vmatprep.subr.bf16.mxu0 %v4391_v20  ;;  %2576 = vmatprep.subr.bf16.mxu1 %v4394_v21  ;;  %v4478_v19 = vld [vmem:[%s6177_s5 + $0x474] ss:$28 sps:$4 sm:$0xff]  }
 0x348   :  { %v4473_v20 = vld [vmem:[%s6177_s5 + $0x10] ss:$28 sps:$4 sm:$0xff]  }
 0x349   :  { %v4476_v21 = vld [vmem:[%s6177_s5 + $0x470] ss:$28 sps:$4 sm:$0xff]  }
 0x34a   :  { %2532 = vmatpush1.bf16.msra.mxu0 %v4389_v23  ;;  %2577 = vmatpush1.bf16.msra.mxu1 %v4392_v24  ;;  %v4481_v23 = vld [vmem:[%s6177_s5 + $0x35c] ss:$28 sps:$4 sm:$0xff]  }
 0x34b   :  { %2533 = vmatprep.subr.bf16.mxu0 %v4397_v26  ;;  %2582 = vmatprep.subr.bf16.mxu1 %v4400_v28  ;;  %v4484_v24 = vld [vmem:[%s6177_s5 + $0x43c] ss:$28 sps:$4 sm:$0xff]  }
 0x34c   :  { %v4479_v26 = vld [vmem:[%s6177_s5 + $0x358] ss:$28 sps:$4 sm:$0xff]  }
 0x34d   :  { %v4482_v28 = vld [vmem:[%s6177_s5 + $0x438] ss:$28 sps:$4 sm:$0xff]  }
 0x34e   :  { %2534 = vmatpush1.bf16.msra.mxu0 %v4395_v29  ;;  %2583 = vmatpush2.bf16.msra.mxu1 %v4398_v30  ;;  %v4487_v29 = vld [vmem:[%s6177_s5 + $0x324] ss:$28 sps:$4 sm:$0xff]  }
 0x34f   :  { %2535 = vmatprep.subr.bf16.mxu0 %v4403_v27  ;;  %2584 = vmatprep.subr.bf16.mxu1 %v4406_v31  ;;  %v4490_v30 = vld [vmem:[%s6177_s5 + $0x404] ss:$28 sps:$4 sm:$0xff]  }
 0x350   :  { %v4485_v27 = vld [vmem:[%s6177_s5 + $0x320] ss:$28 sps:$4 sm:$0xff]  }
 0x351   :  { %v4488_v31 = vld [vmem:[%s6177_s5 + $0x400] ss:$28 sps:$4 sm:$0xff]  }
 0x352   :  { %2536 = vmatpush1.bf16.msra.mxu0 %v4401_v32  ;;  %2585 = vmatpush2.bf16.msra.mxu1 %v4404_v33  ;;  %v4493_v32 = vld [vmem:[%s6177_s5 + $0x2ec] ss:$28 sps:$4 sm:$0xff]  }
 0x353   :  { %2537 = vmatprep.subr.bf16.mxu0 %v4409_v34  ;;  %2586 = vmatprep.subr.bf16.mxu1 %v4412_v35  ;;  %v4496_v33 = vld [vmem:[%s6177_s5 + $0x3cc] ss:$28 sps:$4 sm:$0xff]  }
 0x354   :  { %v4491_v34 = vld [vmem:[%s6177_s5 + $0x2e8] ss:$28 sps:$4 sm:$0xff]  }
 0x355   :  { %v4494_v35 = vld [vmem:[%s6177_s5 + $0x3c8] ss:$28 sps:$4 sm:$0xff]  }
 0x356   :  { %2538 = vmatpush2.bf16.msra.mxu0 %v4407_v36  ;;  %2587 = vmatpush2.bf16.msra.mxu1 %v4410_v37  ;;  %v4499_v36 = vld [vmem:[%s6177_s5 + $0x2b4] ss:$28 sps:$4 sm:$0xff]  }
 0x357   :  { %2539 = vmatprep.subr.bf16.mxu0 %v4415_v38  ;;  %2588 = vmatprep.subr.bf16.mxu1 %v4418_v39  ;;  %v4502_v37 = vld [vmem:[%s6177_s5 + $0x394] ss:$28 sps:$4 sm:$0xff]  }
 0x358   :  { %v4497_v38 = vld [vmem:[%s6177_s5 + $0x2b0] ss:$28 sps:$4 sm:$0xff]  }
 0x359   :  { %v4500_v39 = vld [vmem:[%s6177_s5 + $0x390] ss:$28 sps:$4 sm:$0xff]  }
 0x35a   :  { %2540 = vmatpush2.bf16.msra.mxu0 %v4413_v40  ;;  %2589 = vmatpush2.bf16.msra.mxu1 %v4416_v41  ;;  %v4505_v40 = vld [vmem:[%s6177_s5 + $0x27c] ss:$28 sps:$4 sm:$0xff]   ;;  %v4508_v41 = vld [vmem:[%s6177_s5 + $0x66c] ss:$28 sps:$4 sm:$0xff]  }
 0x35b   :  { %2541 = vmatprep.subr.bf16.mxu0 %v4421_v42  ;;  %2590 = vmatprep.subr.bf16.mxu1 %v4424_v43  ;;  %v4503_v42 = vld [vmem:[%s6177_s5 + $0x278] ss:$28 sps:$4 sm:$0xff]   ;;  %v4506_v43 = vld [vmem:[%s6177_s5 + $0x668] ss:$28 sps:$4 sm:$0xff]  }
 0x35e   :  { %2542 = vmatpush2.bf16.msra.mxu0 %v4419_v44  ;;  %2591 = vmatpush2.bf16.msra.mxu1 %v4422_v45  ;;  %v4511_v44 = vld [vmem:[%s6177_s5 + $0x244] ss:$28 sps:$4 sm:$0xff]   ;;  %v4514_v45 = vld [vmem:[%s6177_s5 + $0x634] ss:$28 sps:$4 sm:$0xff]  }
 0x35f   :  { %2543 = vmatprep.subr.bf16.mxu0 %v4427_v46  ;;  %2592 = vmatprep.subr.bf16.mxu1 %v4430_v47  ;;  %v4509_v46 = vld [vmem:[%s6177_s5 + $0x240] ss:$28 sps:$4 sm:$0xff]   ;;  %v4512_v47 = vld [vmem:[%s6177_s5 + $0x630] ss:$28 sps:$4 sm:$0xff]  }
 0x362   :  { %2544 = vmatpush2.bf16.msra.mxu0 %v4425_v48  ;;  %2593 = vmatpush2.bf16.msra.mxu1 %v4428_v49  ;;  %v4517_v48 = vld [vmem:[%s6177_s5 + $0x20c] ss:$28 sps:$4 sm:$0xff]   ;;  %v4520_v49 = vld [vmem:[%s6177_s5 + $0x5fc] ss:$28 sps:$4 sm:$0xff]  }
 0x363   :  { %2545 = vmatprep.subr.bf16.mxu0 %v4433_v50  ;;  %2603 = vmatprep.subr.bf16.mxu1 %v4436_v52  ;;  %v4515_v50 = vld [vmem:[%s6177_s5 + $0x208] ss:$28 sps:$4 sm:$0xff]   ;;  %v4518_v52 = vld [vmem:[%s6177_s5 + $0x5f8] ss:$28 sps:$4 sm:$0xff]  }
 0x365   :  { %2595 = vmatmul.mubr.bf16.vlgmr.msra.gmra.mxu1 %v5365_v25 }
 0x366   :  { %2546 = vmatpush2.bf16.msra.mxu0 %v4431_v54  ;;  %2604 = vmatpush1.bf16.msra.mxu1 %v4434_v55  ;;  %v4523_v54 = vld [vmem:[%s6177_s5 + $0x1d4] ss:$28 sps:$4 sm:$0xff]   ;;  %v4526_v55 = vld [vmem:[%s6177_s5 + $0x5c4] ss:$28 sps:$4 sm:$0xff]  }
 0x367   :  { %2635 = vmatprep.mubr.bf16.mxu1 %v5337_v51  ;;  %2547 = vmatprep.subr.bf16.mxu0 %v4439_v56  ;;  %v4521_v56 = vld [vmem:[%s6177_s5 + $0x1d0] ss:$28 sps:$4 sm:$0xff]  }
 0x368   :  { %2605 = vmatprep.subr.bf16.mxu1 %v4442_v58  ;;  %v4524_v58 = vld [vmem:[%s6177_s5 + $0x5c0] ss:$28 sps:$4 sm:$0xff]  }
 0x36a   :  { %2548 = vmatpush2.bf16.msra.mxu0 %v4437_v57  ;;  %2606 = vmatpush1.bf16.msra.mxu1 %v4440_v59  ;;  %v4529_v57 = vld [vmem:[%s6177_s5 + $0x58c] ss:$28 sps:$4 sm:$0xff]  }
 0x36b   :  { %2549 = vmatprep.subr.bf16.mxu0 %v4445_v60  ;;  %2607 = vmatprep.subr.bf16.mxu1 %v4448_v22  ;;  %v4527_v59 = vld [vmem:[%s6177_s5 + $0x588] ss:$28 sps:$4 sm:$0xff]   ;;  %v4530_v60 = vld [vmem:[%s6177_s5 + $0x520] ss:$28 sps:$4 sm:$0xff]   ;;  %v4533_v22 = vld [vmem:[%s6177_s5 + $0x554] ss:$28 sps:$4 sm:$0xff]  }
 0x36e   :  { %2550 = vmatpush2.bf16.msra.mxu0 %v4443_v61  ;;  %2608 = vmatpush1.bf16.msra.mxu1 %v4446_v63  ;;  %v4531_v61 = vld [vmem:[%s6177_s5 + $0x550] ss:$28 sps:$4 sm:$0xff]   ;;  %v4534_v63 = vld [vmem:[%s6177_s5 + $0x4e8] ss:$28 sps:$4 sm:$0xff]  }
 0x36f   :  { %2551 = vmatprep.subr.bf16.mxu0 %v4451_v0  ;;  %2609 = vmatprep.subr.bf16.mxu1 %v4454_v1  ;;  %v4535_v0 = vld [vmem:[%s6177_s5 + $0x360] ss:$28 sps:$4 sm:$0xff]  }
 0x370   :  { %v4536_v1 = vld [vmem:[%s6177_s5 + $0x1a0] ss:$28 sps:$4 sm:$0xff]  }
 0x372   :  { %2552 = vmatpush2.bf16.msra.mxu0 %v4449_v3  ;;  %2610 = vmatpush1.bf16.msra.mxu1 %v4452_v4  ;;  %v4538_v3 = vld [vmem:[%s6177_s5 + $0x328] ss:$28 sps:$4 sm:$0xff]  }
 0x373   :  { %2611 = vmatprep.subr.bf16.mxu1 %v4457_v5  ;;  %2644 = vmatprep.subr.bf16.mxu0 %v4460_v6  ;;  %v4539_v4 = vld [vmem:[%s6177_s5 + $0x168] ss:$28 sps:$4 sm:$0xff]   ;;  %v4540_v5 = vld [vmem:[%s6177_s5 + $0x478] ss:$28 sps:$4 sm:$0xff]   ;;  %v4541_v6 = vld [vmem:[%s6177_s5 + $0x2f0] ss:$28 sps:$4 sm:$0xff]  }
 0x375   :  { %2554 = vmatmul.mubr.bf16.vlgmr.msra.gmra.mxu0 %v5342_v53 }
 0x376   :  { %2612 = vmatpush1.bf16.msra.mxu1 %v4455_v7  ;;  %2645 = vmatpush1.bf16.msra.mxu0 %v4458_v8  ;;  %v4543_v7 = vld [vmem:[%s6177_s5 + $0x440] ss:$28 sps:$4 sm:$0xff]   ;;  %v4544_v8 = vld [vmem:[%s6177_s5 + $0x2b8] ss:$28 sps:$4 sm:$0xff]  }
 0x377   :  { %3952 = vmatprep.mubr.msk.bf16.mxu0 %vm2435_vm7, %v5357_v62  ;;  %2613 = vmatprep.subr.bf16.mxu1 %v4463_v9  ;;  %v4545_v9 = vld [vmem:[%s6177_s5 + $0xf8] ss:$28 sps:$4 sm:$0xff]  }
 0x378   :  { %2646 = vmatprep.subr.bf16.mxu0 %v4466_v10  ;;  %v4546_v10 = vld [vmem:[%s6177_s5 + $0x408] ss:$28 sps:$4 sm:$0xff]  }
 0x37a   :  { %2614 = vmatpush1.bf16.msra.mxu1 %v4461_v11  ;;  %2647 = vmatpush1.bf16.msra.mxu0 %v4464_v12  ;;  %v4547_v11 = vld [vmem:[%s6177_s5 + $0x280] ss:$28 sps:$4 sm:$0xff]  }
 0x37b   :  { %2615 = vmatprep.subr.bf16.mxu1 %v4469_v14  ;;  %2648 = vmatprep.subr.bf16.mxu0 %v4472_v15  ;;  %v4548_v12 = vld [vmem:[%s6177_s5 + $0xc0] ss:$28 sps:$4 sm:$0xff]   ;;  %v4549_v14 = vld [vmem:[%s6177_s5 + $0x3d0] ss:$28 sps:$4 sm:$0xff]   ;;  %v4550_v15 = vld [vmem:[%s6177_s5 + $0x248] ss:$28 sps:$4 sm:$0xff]  }
 0x37e   :  { %2616 = vmatpush1.bf16.msra.mxu1 %v4467_v16  ;;  %2649 = vmatpush1.bf16.msra.mxu0 %v4470_v17  ;;  %v4551_v16 = vld [vmem:[%s6177_s5 + $0x88] ss:$28 sps:$4 sm:$0xff]   ;;  %v4552_v17 = vld [vmem:[%s6177_s5 + $0x398] ss:$28 sps:$4 sm:$0xff]  }
 0x37f   :  { %2617 = vmatprep.subr.bf16.mxu1 %v4475_v18  ;;  %2650 = vmatprep.subr.bf16.mxu0 %v4478_v19  ;;  %v4553_v18 = vld [vmem:[%s6177_s5 + $0x210] ss:$28 sps:$4 sm:$0xff]  }
 0x380   :  { %v4554_v19 = vld [vmem:[%s6177_s5 + $0x50] ss:$28 sps:$4 sm:$0xff]  }
 0x382   :  { %2618 = vmatpush1.bf16.msra.mxu1 %v4473_v20  ;;  %2651 = vmatpush1.bf16.msra.mxu0 %v4476_v21  ;;  %v4555_v20 = vld [vmem:[%s6177_s5 + $0x670] ss:$28 sps:$4 sm:$0xff]   ;;  %v4556_v21 = vld [vmem:[%s6177_s5 + $0x1d8] ss:$28 sps:$4 sm:$0xff]  }
 0x383   :  { %2619 = vmatprep.subr.bf16.mxu1 %v4481_v23  ;;  %2652 = vmatprep.subr.bf16.mxu0 %v4484_v24  ;;  %v4557_v23 = vld [vmem:[%s6177_s5 + $0x18] ss:$28 sps:$4 sm:$0xff]  }
 0x384   :  { %v4558_v24 = vld [vmem:[%s6177_s5 + $0x638] ss:$28 sps:$4 sm:$0xff]  }
 0x386   :  { %2620 = vmatpush2.bf16.msra.mxu1 %v4479_v26  ;;  %2653 = vmatpush1.bf16.msra.mxu0 %v4482_v28  ;;  %v4561_v26 = vld [vmem:[%s6179_s7 + $0x74] ss:$8 sps:$4 sm:$0xff]   ;;  %v4559_v28 = vld [vmem:[%s6179_s7 + $0x70] ss:$8 sps:$4 sm:$0xff]  }
 0x387   :  { %2621 = vmatprep.subr.bf16.mxu1 %v4487_v29  ;;  %2654 = vmatprep.subr.bf16.mxu0 %v4490_v30  ;;  %v4562_v29 = vld [vmem:[%s6177_s5 + $0x600] ss:$28 sps:$4 sm:$0xff]   ;;  %v4565_v30 = vld [vmem:[%s6179_s7 + $0x64] ss:$8 sps:$4 sm:$0xff]  }
 0x38a   :  { %2622 = vmatpush2.bf16.msra.mxu1 %v4485_v27  ;;  %2655 = vmatpush1.bf16.msra.mxu0 %v4488_v31  ;;  %v4563_v27 = vld [vmem:[%s6179_s7 + $0x60] ss:$8 sps:$4 sm:$0xff]  }
 0x38b   :  { %2623 = vmatprep.subr.bf16.mxu1 %v4493_v32  ;;  %2656 = vmatprep.subr.bf16.mxu0 %v4496_v33  ;;  %v4566_v31 = vld [vmem:[%s6177_s5 + $0x5c8] ss:$28 sps:$4 sm:$0xff]   ;;  %v4569_v32 = vld [vmem:[%s6179_s7 + $0x54] ss:$8 sps:$4 sm:$0xff]   ;;  %v4570_v33 = vld [vmem:[%s6177_s5 + $0x590] ss:$28 sps:$4 sm:$0xff]  }
 0x38e   :  { %2624 = vmatpush2.bf16.msra.mxu1 %v4491_v34  ;;  %2657 = vmatpush1.bf16.msra.mxu0 %v4494_v35  ;;  %v4573_v34 = vld [vmem:[%s6179_s7 + $0x44] ss:$8 sps:$4 sm:$0xff]   ;;  %v4571_v35 = vld [vmem:[%s6179_s7 + $0x40] ss:$8 sps:$4 sm:$0xff]  }
 0x38f   :  { %2625 = vmatprep.subr.bf16.mxu1 %v4499_v36  ;;  %2658 = vmatprep.subr.bf16.mxu0 %v4502_v37  ;;  %v4574_v36 = vld [vmem:[%s6177_s5 + $0x558] ss:$28 sps:$4 sm:$0xff]  }
 0x390   :  { %v4577_v37 = vld [vmem:[%s6179_s7 + $0x34] ss:$8 sps:$4 sm:$0xff]  }
 0x392   :  { %2626 = vmatpush2.bf16.msra.mxu1 %v4497_v38  ;;  %2659 = vmatpush1.bf16.msra.mxu0 %v4500_v39  ;;  %v4607_v38 = vld [vmem:[%s6179_s7 + $0x174] ss:$8 sps:$4 sm:$0xff]   ;;  %v4575_v39 = vld [vmem:[%s6179_s7 + $0x30] ss:$8 sps:$4 sm:$0xff]  }
 0x393   :  { %2627 = vmatprep.subr.bf16.mxu1 %v4505_v40  ;;  %2664 = vmatprep.subr.bf16.mxu0 %v4508_v41  ;;  %v4580_v40 = vld [vmem:[%s6179_s7 + $0x24] ss:$8 sps:$4 sm:$0xff]   ;;  %v4605_v41 = vld [vmem:[%s6179_s7 + $0x170] ss:$8 sps:$4 sm:$0xff]  }
 0x396   :  { %2628 = vmatpush2.bf16.msra.mxu1 %v4503_v42  ;;  %2665 = vmatpush2.bf16.msra.mxu0 %v4506_v43  ;;  %v4613_v42 = vld [vmem:[%s6179_s7 + $0x164] ss:$8 sps:$4 sm:$0xff]   ;;  %v4578_v43 = vld [vmem:[%s6179_s7 + $0x20] ss:$8 sps:$4 sm:$0xff]  }
 0x397   :  { %2629 = vmatprep.subr.bf16.mxu1 %v4511_v44  ;;  %2666 = vmatprep.subr.bf16.mxu0 %v4514_v45  ;;  %v4583_v44 = vld [vmem:[%s6179_s7 + $0x14] ss:$8 sps:$4 sm:$0xff]   ;;  %v4611_v45 = vld [vmem:[%s6179_s7 + $0x160] ss:$8 sps:$4 sm:$0xff]  }
 0x39a   :  { %2630 = vmatpush2.bf16.msra.mxu1 %v4509_v46  ;;  %2667 = vmatpush2.bf16.msra.mxu0 %v4512_v47  ;;  %v4581_v46 = vld [vmem:[%s6179_s7 + $0x10] ss:$8 sps:$4 sm:$0xff]   ;;  %v4586_v47 = vld [vmem:[%s6179_s7 + $0x4] ss:$8 sps:$4 sm:$0xff]  }
 0x39b   :  { %2631 = vmatprep.subr.bf16.mxu1 %v4517_v48  ;;  %2668 = vmatprep.subr.bf16.mxu0 %v4520_v49  ;;  %v4617_v48 = vld [vmem:[%s6179_s7 + $0x150] ss:$8 sps:$4 sm:$0xff]   ;;  %v4622_v49 = vld [vmem:[%s6179_s7 + $0x144] ss:$8 sps:$4 sm:$0xff]  }
 0x39e   :  { %2632 = vmatpush2.bf16.msra.mxu1 %v4515_v50  ;;  %2669 = vmatpush2.bf16.msra.mxu0 %v4518_v52  ;;  %v4584_v50 = vld [vmem:[%s6179_s7] ss:$8 sps:$4 sm:$0xff]   ;;  %v4589_v52 = vld [vmem:[%s6179_s7 + $0xf4] ss:$8 sps:$4 sm:$0xff]  }
 0x39f   :  { %2633 = vmatprep.subr.bf16.mxu1 %v4523_v54  ;;  %2670 = vmatprep.subr.bf16.mxu0 %v4526_v55  ;;  %v4620_v54 = vld [vmem:[%s6179_s7 + $0x140] ss:$8 sps:$4 sm:$0xff]   ;;  %v4625_v55 = vld [vmem:[%s6179_s7 + $0x134] ss:$8 sps:$4 sm:$0xff]  }
 0x3a2   :  { %2634 = vmatpush2.bf16.msra.mxu1 %v4521_v56  ;;  %2671 = vmatpush2.bf16.msra.mxu0 %v4524_v58  ;;  %v4587_v56 = vld [vmem:[%s6179_s7 + $0xf0] ss:$8 sps:$4 sm:$0xff]   ;;  %v4592_v58 = vld [vmem:[%s6179_s7 + $0xe4] ss:$8 sps:$4 sm:$0xff]  }
 0x3a3   :  { %2672 = vmatprep.subr.bf16.mxu0 %v4529_v57  ;;  %2725 = vmatprep.subr.bf16.mxu1 %v4745_v2  ;;  %v4623_v57 = vld [vmem:[%s6179_s7 + $0x130] ss:$8 sps:$4 sm:$0xff]  }
 0x3a5   :  { %2636 = vmatmul.mubr.bf16.vlgmr.msra.gmra.mxu1 %v5342_v53 }
 0x3a6   :  { %2673 = vmatpush2.bf16.msra.mxu0 %v4527_v59  ;;  %2726 = vmatpush1.bf16.msra.mxu1 %v4530_v60  ;;  %v4628_v59 = vld [vmem:[%s6179_s7 + $0x124] ss:$8 sps:$4 sm:$0xff]  }
 0x3a7   :  { %3953 = vmatprep.mubr.msk.bf16.mxu1 %vm2435_vm7, %v5357_v62  ;;  %2674 = vmatprep.subr.bf16.mxu0 %v4533_v22  ;;  %v4537_v62 = vld [vmem:[%s6177_s5 + $0x4b0] ss:$28 sps:$4 sm:$0xff]   ;;  %v1326_v22 = vsub.s32 1, %v4829_v13 }
 0x3a8   :  { %2727 = vmatprep.subr.bf16.mxu1 %v4745_v2 }
 0x3aa   :  { %2675 = vmatpush2.bf16.msra.mxu0 %v4531_v61  ;;  %2728 = vmatpush1.bf16.msra.mxu1 %v4534_v63  ;;  %v4590_v61 = vld [vmem:[%s6179_s7 + $0xe0] ss:$8 sps:$4 sm:$0xff]  }
 0x3ab   :  { %4085 = vmatprep.subr.bf16.mxu0 %v4535_v0  ;;  %2729 = vmatprep.subr.bf16.mxu1 %v4745_v2  ;;  %v4595_v0 = vld [vmem:[%s6179_s7 + $0xd4] ss:$8 sps:$4 sm:$0xff]  }
 0x3ad   :  { %2677 = vmatmul.mubr.bf16.vlgmr.msra.gmra.mxu0 %v5365_v25 }
 0x3ae   :  { %4086 = vmatpush3.bf16.msra.mxu0 %v4536_v1  ;;  %2717 = vmatprep.mubr.bf16.mxu0 %v5337_v51  ;;  %v4542_v51 = vld [vmem:[%s6177_s5 + $0x130] ss:$28 sps:$4 sm:$0xff]   ;;  %v4626_v1 = vld [vmem:[%s6179_s7 + $0x120] ss:$8 sps:$4 sm:$0xff]  }
 0x3af   :  { %2730 = vmatpush1.bf16.msra.mxu1 %v4537_v62  ;;  %4087 = vmatprep.subr.bf16.mxu0 %v4538_v3  ;;  %v4631_v62 = vld [vmem:[%s6179_s7 + $0x114] ss:$8 sps:$4 sm:$0xff]   ;;  %v5931_v3 = vld [vmem:[%s6178_s6] sm:$0x7f] }
 0x3b0   :  { %2731 = vmatprep.subr.bf16.mxu1 %v4745_v2 }
 0x3b2   :  { %4088 = vmatpush3.bf16.msra.mxu0 %v4539_v4 }
 0x3b3   :  { %2732 = vmatpush1.bf16.msra.mxu1 %v4540_v5  ;;  %4089 = vmatprep.subr.bf16.mxu0 %v4541_v6  ;;  %v1327_v5 = vrot.slane %v5931_v3, %v1326_v22  ;;  %v4593_v6 = vld [vmem:[%s6179_s7 + $0xd0] ss:$8 sps:$4 sm:$0xff]  }
 0x3b4   :  { %2733 = vmatprep.subr.bf16.mxu1 %v4745_v2 }
 0x3b6   :  { %4090 = vmatpush3.bf16.msra.mxu0 %v4542_v51 }
 0x3b7   :  { %2734 = vmatpush1.bf16.msra.mxu1 %v4543_v7  ;;  %4091 = vmatprep.subr.bf16.mxu0 %v4544_v8  ;;  %v4598_v7 = vld [vmem:[%s6179_s7 + $0xc4] ss:$8 sps:$4 sm:$0xff]   ;;  %v4629_v8 = vld [vmem:[%s6179_s7 + $0x110] ss:$8 sps:$4 sm:$0xff]  }
 0x3b8   :  { %2735 = vmatprep.subr.bf16.mxu1 %v4745_v2 }
 0x3ba   :  { %4092 = vmatpush3.bf16.msra.mxu0 %v4545_v9  ;;  %v4634_v9 = vld [vmem:[%s6179_s7 + $0x104] ss:$8 sps:$4 sm:$0xff]  }
 0x3bb   :  { %2736 = vmatpush1.bf16.msra.mxu1 %v4546_v10  ;;  %4093 = vmatprep.subr.bf16.mxu0 %v4547_v11  ;;  %v1322_v11 = vsub.s32 0, %v4829_v13 }
 0x3bc   :  { %2737 = vmatprep.subr.bf16.mxu1 %v4745_v2 }
 0x3be   :  { %4094 = vmatpush3.bf16.msra.mxu0 %v4548_v12 }
 0x3bf   :  { %2738 = vmatpush1.bf16.msra.mxu1 %v4549_v14  ;;  %4095 = vmatprep.subr.bf16.mxu0 %v4550_v15  ;;  %v4596_v14 = vld [vmem:[%s6179_s7 + $0xc0] ss:$8 sps:$4 sm:$0xff]  }
 0x3c0   :  { %2739 = vmatprep.subr.bf16.mxu1 %v4745_v2 }
 0x3c2   :  { %4096 = vmatpush3.bf16.msra.mxu0 %v4551_v16  ;;  %v4601_v16 = vld [vmem:[%s6179_s7 + $0xb4] ss:$8 sps:$4 sm:$0xff]  }
 0x3c3   :  { %2740 = vmatpush1.bf16.msra.mxu1 %v4552_v17  ;;  %4097 = vmatprep.subr.bf16.mxu0 %v4553_v18  ;;  %v4632_v17 = vld [vmem:[%s6179_s7 + $0x100] ss:$8 sps:$4 sm:$0xff]  }
 0x3c4   :  { %2745 = vmatprep.subr.bf16.mxu1 %v4745_v2 }
 0x3c6   :  { %4098 = vmatpush3.bf16.msra.mxu0 %v4554_v19  ;;  %v4637_v19 = vld [vmem:[%s6179_s7 + $0x1f4] ss:$8 sps:$4 sm:$0xff]  }
 0x3c7   :  { %2746 = vmatpush2.bf16.msra.mxu1 %v4555_v20  ;;  %4099 = vmatprep.subr.bf16.mxu0 %v4556_v21  ;;  %v1323_v21 = vrot.slane %v5931_v3, %v1322_v11 }
 0x3c8   :  { %2747 = vmatprep.subr.bf16.mxu1 %v4745_v2 }
 0x3ca   :  { %4100 = vmatpush3.bf16.msra.mxu0 %v4557_v23 }
 0x3cb   :  { %2748 = vmatpush2.bf16.msra.mxu1 %v4558_v24  ;;  %3433 = vmatprep.subr.bf16.mxu0 %v4561_v26  ;;  %v4599_v24 = vld [vmem:[%s6179_s7 + $0xb0] ss:$8 sps:$4 sm:$0xff]  }
 0x3cc   :  { %2749 = vmatprep.subr.bf16.mxu1 %v4745_v2 }
 0x3cd   :  { %2718 = vmatmul.mubr.bf16.vlgmr.msra.gmra.mxu0 %v5342_v53  ;;  %v4567_v53 = vld [vmem:[%s6179_s7 + $0x50] ss:$8 sps:$4 sm:$0xff]  }
 0x3ce   :  { %3434 = vmatpush1.bf16.msra.mxu0 %v4559_v28  ;;  %v4604_v28 = vld [vmem:[%s6179_s7 + $0xa4] ss:$8 sps:$4 sm:$0xff]  }
 0x3cf   :  { %2750 = vmatpush2.bf16.msra.mxu1 %v4562_v29  ;;  %3435 = vmatprep.subr.bf16.mxu0 %v4565_v30  ;;  %v4635_v30 = vld [vmem:[%s6179_s7 + $0x1f0] ss:$8 sps:$4 sm:$0xff]  }
 0x3d0   :  { %2751 = vmatprep.subr.bf16.mxu1 %v4745_v2 }
 0x3d2   :  { %3436 = vmatpush1.bf16.msra.mxu0 %v4563_v27 }
 0x3d3   :  { %2752 = vmatpush2.bf16.msra.mxu1 %v4566_v31  ;;  %3437 = vmatprep.subr.bf16.mxu0 %v4569_v32  ;;  %v4640_v31 = vld [vmem:[%s6179_s7 + $0x1e4] ss:$8 sps:$4 sm:$0xff]  }
 0x3d4   :  { %2753 = vmatprep.subr.bf16.mxu1 %v4745_v2 }
 0x3d6   :  { %3438 = vmatpush1.bf16.msra.mxu0 %v4567_v53  ;;  %v4602_v53 = vld [vmem:[%s6179_s7 + $0xa0] ss:$8 sps:$4 sm:$0xff]  }
 0x3d7   :  { %2754 = vmatpush2.bf16.msra.mxu1 %v4570_v33  ;;  %3439 = vmatprep.subr.bf16.mxu0 %v4573_v34  ;;  %v4610_v33 = vld [vmem:[%s6179_s7 + $0x94] ss:$8 sps:$4 sm:$0xff]  }
 0x3d8   :  { %2755 = vmatprep.subr.bf16.mxu1 %v4745_v2 }
 0x3da   :  { %3440 = vmatpush1.bf16.msra.mxu0 %v4571_v35  ;;  %v4638_v35 = vld [vmem:[%s6179_s7 + $0x1e0] ss:$8 sps:$4 sm:$0xff]  }
 0x3db   :  { %2756 = vmatpush2.bf16.msra.mxu1 %v4574_v36  ;;  %3441 = vmatprep.subr.bf16.mxu0 %v4577_v37  ;;  %v4643_v36 = vld [vmem:[%s6179_s7 + $0x1d4] ss:$8 sps:$4 sm:$0xff]   ;;  %v4608_v37 = vld [vmem:[%s6179_s7 + $0x90] ss:$8 sps:$4 sm:$0xff]  }
 0x3dc   :  { %3474 = vmatprep.subr.bf16.mxu1 %v4607_v38  ;;  %v4616_v38 = vld [vmem:[%s6179_s7 + $0x84] ss:$8 sps:$4 sm:$0xff]  }
 0x3de   :  { %2758 = vmatmul.mubr.bf16.vlgmr.msra.gmra.mxu1 %v5365_v25  ;;  %3442 = vmatpush1.bf16.msra.mxu0 %v4575_v39  ;;  %v4619_v25 = vld [vmem:[%s6179_s7 + $0x154] ss:$8 sps:$4 sm:$0xff]  }
 0x3df   :  { %3443 = vmatprep.subr.bf16.mxu0 %v4580_v40  ;;  %3475 = vmatpush1.bf16.msra.mxu1 %v4605_v41  ;;  %v4641_v40 = vld [vmem:[%s6179_s7 + $0x1d0] ss:$8 sps:$4 sm:$0xff]   ;;  %v4646_v41 = vld [vmem:[%s6179_s7 + $0x1c4] ss:$8 sps:$4 sm:$0xff]  }
 0x3e0   :  { %3476 = vmatprep.subr.bf16.mxu1 %v4613_v42  ;;  %v4614_v42 = vld [vmem:[%s6179_s7 + $0x80] ss:$8 sps:$4 sm:$0xff]  }
 0x3e2   :  { %3444 = vmatpush1.bf16.msra.mxu0 %v4578_v43  ;;  %v4655_v43 = vld [vmem:[%s6179_s7 + $0x274] ss:$8 sps:$4 sm:$0xff]  }
 0x3e3   :  { %3445 = vmatprep.subr.bf16.mxu0 %v4583_v44  ;;  %3477 = vmatpush1.bf16.msra.mxu1 %v4611_v45  ;;  %v4644_v45 = vld [vmem:[%s6179_s7 + $0x1c0] ss:$8 sps:$4 sm:$0xff]  }
 0x3e4   :  { %3478 = vmatprep.subr.bf16.mxu1 %v4619_v25  ;;  %v4649_v25 = vld [vmem:[%s6179_s7 + $0x1b4] ss:$8 sps:$4 sm:$0xff]  }
 0x3e6   :  { %3446 = vmatpush1.bf16.msra.mxu0 %v4581_v46  ;;  %v4653_v46 = vld [vmem:[%s6179_s7 + $0x270] ss:$8 sps:$4 sm:$0xff]  }
 0x3e7   :  { %3447 = vmatprep.subr.bf16.mxu0 %v4586_v47  ;;  %3479 = vmatpush1.bf16.msra.mxu1 %v4617_v48  ;;  %v4661_v48 = vld [vmem:[%s6179_s7 + $0x264] ss:$8 sps:$4 sm:$0xff]  }
 0x3e8   :  { %3480 = vmatprep.subr.bf16.mxu1 %v4622_v49  ;;  %v4647_v49 = vld [vmem:[%s6179_s7 + $0x1b0] ss:$8 sps:$4 sm:$0xff]  }
 0x3ea   :  { %3448 = vmatpush1.bf16.msra.mxu0 %v4584_v50  ;;  %v4652_v50 = vld [vmem:[%s6179_s7 + $0x1a4] ss:$8 sps:$4 sm:$0xff]  }
 0x3eb   :  { %3449 = vmatprep.subr.bf16.mxu0 %v4589_v52  ;;  %3481 = vmatpush1.bf16.msra.mxu1 %v4620_v54  ;;  %v4659_v52 = vld [vmem:[%s6179_s7 + $0x260] ss:$8 sps:$4 sm:$0xff]   ;;  %v4667_v54 = vld [vmem:[%s6179_s7 + $0x254] ss:$8 sps:$4 sm:$0xff]  }
 0x3ec   :  { %3482 = vmatprep.subr.bf16.mxu1 %v4625_v55  ;;  %v4650_v55 = vld [vmem:[%s6179_s7 + $0x1a0] ss:$8 sps:$4 sm:$0xff]  }
 0x3ed   :  { %v2473_v60 = vpop.f32.mrf.mxu1 }
 0x3ee   :  { %3450 = vmatpush2.bf16.msra.mxu0 %v4587_v56  ;;  %v2474_v32 = vadd.f32 %v2473_v60, %v1323_v21  ;;  %v4658_v56 = vld [vmem:[%s6179_s7 + $0x194] ss:$8 sps:$4 sm:$0xff]   ;;  %v4664_v60 = vld [vmem:[%s6179_s7 + $0x184] ss:$8 sps:$4 sm:$0xff]   ;;  %v1334_v21 = vsub.s32 3, %v4829_v13 }
 0x3ef   :  { %v2475_v63 = vpop.f32.mrf.mxu1  ;;  %3451 = vmatprep.subr.bf16.mxu0 %v4592_v58  ;;  %3483 = vmatpush1.bf16.msra.mxu1 %v4623_v57  ;;  %v4665_v58 = vld [vmem:[%s6179_s7 + $0x250] ss:$8 sps:$4 sm:$0xff]   ;;  %v4670_v57 = vld [vmem:[%s6179_s7 + $0x244] ss:$8 sps:$4 sm:$0xff]  }
 0x3f0   :  { %3484 = vmatprep.subr.bf16.mxu1 %v4628_v59  ;;  %v2476_v12 = vadd.f32 %v2475_v63, %v1327_v5  ;;  %v4656_v59 = vld [vmem:[%s6179_s7 + $0x190] ss:$8 sps:$4 sm:$0xff]   ;;  %v4673_v63 = vld [vmem:[%s6179_s7 + $0x234] ss:$8 sps:$4 sm:$0xff]   ;;  %v4674_v5 = vld [vmem:[%s6179_s7 + $0x220] ss:$8 sps:$4 sm:$0xff]  }
 0x3f1   :  { %v2477_v4 = vpop.f32.mrf.mxu1 }
 0x3f2   :  { %3452 = vmatpush2.bf16.msra.mxu0 %v4590_v61  ;;  %v4668_v61 = vld [vmem:[%s6179_s7 + $0x240] ss:$8 sps:$4 sm:$0xff]   ;;  %v4676_v4 = vld [vmem:[%s6179_s7 + $0x224] ss:$8 sps:$4 sm:$0xff]  }
 0x3f3   :  { %v2478_v51 = vpop.f32.mrf.mxu1  ;;  %3453 = vmatprep.subr.bf16.mxu0 %v4595_v0  ;;  %3485 = vmatpush1.bf16.msra.mxu1 %v4626_v1  ;;  %v4662_v0 = vld [vmem:[%s6179_s7 + $0x180] ss:$8 sps:$4 sm:$0xff]   ;;  %v4709_v1 = vld [vmem:[%s6179_s7 + $0x334] ss:$8 sps:$4 sm:$0xff]  }
 0x3f4   :  { %3486 = vmatprep.subr.bf16.mxu1 %v4631_v62  ;;  %v4671_v62 = vld [vmem:[%s6179_s7 + $0x230] ss:$8 sps:$4 sm:$0xff]  }
 0x3f5   :  { %v2514_v10 = vpop.f32.mrf.mxu0  ;;  %v4677_v51 = vld [vmem:[%s6179_s7 + $0x210] ss:$8 sps:$4 sm:$0xff]  }
 0x3f6   :  { %3454 = vmatpush2.bf16.msra.mxu0 %v4593_v6  ;;  %v2515_v34 = vadd.f32 %v2514_v10, %v2474_v32  ;;  %v4679_v6 = vld [vmem:[%s6179_s7 + $0x214] ss:$8 sps:$4 sm:$0xff]  }
 0x3f7   :  { %v2516_v15 = vpop.f32.mrf.mxu0  ;;  %3455 = vmatprep.subr.bf16.mxu0 %v4598_v7  ;;  %3487 = vmatpush1.bf16.msra.mxu1 %v4629_v8  ;;  %v4682_v7 = vld [vmem:[%s6179_s7 + $0x204] ss:$8 sps:$4 sm:$0xff]   ;;  %v4697_v32 = vld [vmem:[%s6179_s7 + $0x2b4] ss:$8 sps:$4 sm:$0xff]  }
 0x3f8   :  { %v2517_v18 = vadd.f32 %v2516_v15, %v2476_v12  ;;  %3488 = vmatprep.subr.bf16.mxu1 %v4634_v9  ;;  %v2772_v39 = vmul.f32 0.01, %v2515_v34  ;;  %vm2765_vm9 = vcmp.gt.f32.partialorder %v2515_v34, 0.0  ;;  %v4680_v9 = vld [vmem:[%s6179_s7 + $0x200] ss:$8 sps:$4 sm:$0xff]  }
 0x3f9   :  { %v2518_v20 = vpop.f32.mrf.mxu0  ;;  %v4685_v12 = vld [vmem:[%s6179_s7 + $0x2f4] ss:$8 sps:$4 sm:$0xff]   ;;  %v4683_v15 = vld [vmem:[%s6179_s7 + $0x2f0] ss:$8 sps:$4 sm:$0xff]  }
 0x3fa   :  { %vm2766_vm8 = vcmp.gt.f32.partialorder %v2517_v18, 0.0  ;;  %v2773_v23 = vmul.f32 0.01, %v2517_v18  ;;  %3456 = vmatpush2.bf16.msra.mxu0 %v4596_v14  ;;  %v2779_v44 = vsel %vm2765_vm9, %v2515_v34, %v2772_v39  ;;  %v4691_v20 = vld [vmem:[%s6179_s7 + $0x2d4] ss:$8 sps:$4 sm:$0xff]  }
 0x3fb   :  { %v2519_v26 = vpop.f32.mrf.mxu0  ;;  %3457 = vmatprep.subr.bf16.mxu0 %v4601_v16  ;;  %3489 = vmatpush1.bf16.msra.mxu1 %v4632_v17  ;;  %v2786_v47 = vpack.c.bf16 %v2779_v44, %v2779_v44  ;;  %v4688_v17 = vld [vmem:[%s6179_s7 + $0x2e4] ss:$8 sps:$4 sm:$0xff]  }
 0x3fc   :  { %v2780_v29 = vsel %vm2766_vm8, %v2517_v18, %v2773_v23  ;;  %3490 = vmatprep.subr.bf16.mxu1 %v4637_v19  ;;  %v1330_v18 = vsub.s32 2, %v4829_v13  ;;  %v4686_v19 = vld [vmem:[%s6179_s7 + $0x2e0] ss:$8 sps:$4 sm:$0xff]   ;;  %v4694_v26 = vld [vmem:[%s6179_s7 + $0x2c4] ss:$8 sps:$4 sm:$0xff]  }
 0x3fd   :  { %v2787_v27 = vpack.c.bf16 %v2780_v29, %v2780_v29  ;;  %v4700_v39 = vld [vmem:[%s6179_s7 + $0x2a4] ss:$8 sps:$4 sm:$0xff]  }
 0x3fe   :  { %3458 = vmatpush2.bf16.msra.mxu0 %v4599_v24  ;;  %v1331_v23 = vrot.slane %v5931_v3, %v1330_v18  ;;  %v4689_v24 = vld [vmem:[%s6179_s7 + $0x2d0] ss:$8 sps:$4 sm:$0xff]  }
 0x3ff   :  { %3465 = vmatprep.mubr.bf16.mxu0 %v2787_v27  ;;  %3459 = vmatprep.subr.bf16.mxu0 %v4604_v28  ;;  %v1335_v28 = vrot.slane %v5931_v3, %v1334_v21  ;;  %v4692_v27 = vld [vmem:[%s6179_s7 + $0x2c0] ss:$8 sps:$4 sm:$0xff]  }
 0x400   :  { %3491 = vmatpush2.bf16.msra.mxu1 %v4635_v30 }
 0x401   :  { %3492 = vmatprep.subr.bf16.mxu1 %v4640_v31 }
 0x402   :  { %3460 = vmatpush2.bf16.msra.mxu0 %v4602_v53 }
 0x403   :  { %3461 = vmatprep.subr.bf16.mxu0 %v4610_v33 }
 0x404   :  { %3493 = vmatpush2.bf16.msra.mxu1 %v4638_v35 }
 0x405   :  { %3494 = vmatprep.subr.bf16.mxu1 %v4643_v36 }
 0x406   :  { %3462 = vmatpush2.bf16.msra.mxu0 %v4608_v37  ;;  %v4695_v37 = vld [vmem:[%s6179_s7 + $0x2b0] ss:$8 sps:$4 sm:$0xff]  }
 0x407   :  { %3463 = vmatprep.subr.bf16.mxu0 %v4616_v38 }
 0x408   :  { %3495 = vmatpush2.bf16.msra.mxu1 %v4641_v40 }
 0x409   :  { %3496 = vmatprep.subr.bf16.mxu1 %v4646_v41 }
 0x40a   :  { %3464 = vmatpush2.bf16.msra.mxu0 %v4614_v42 }
 0x40b   :  { %3515 = vmatprep.subr.bf16.mxu0 %v4655_v43  ;;  %v4698_v43 = vld [vmem:[%s6179_s7 + $0x2a0] ss:$8 sps:$4 sm:$0xff]  }
 0x40c   :  { %3497 = vmatpush2.bf16.msra.mxu1 %v4644_v45  ;;  %v4703_v45 = vld [vmem:[%s6179_s7 + $0x294] ss:$8 sps:$4 sm:$0xff]  }
 0x40d   :  { %3466 = vmatmul.mubr.bf16.vlgmr.msra.gmra.mxu0 %v2786_v47  ;;  %3498 = vmatprep.subr.bf16.mxu1 %v4649_v25  ;;  %v4707_v25 = vld [vmem:[%s6179_s7 + $0x330] ss:$8 sps:$4 sm:$0xff]   ;;  %v4712_v47 = vld [vmem:[%s6179_s7 + $0x324] ss:$8 sps:$4 sm:$0xff]  }
 0x40e   :  { %3516 = vmatpush1.bf16.msra.mxu0 %v4653_v46 }
 0x40f   :  { %3517 = vmatprep.subr.bf16.mxu0 %v4661_v48  ;;  %v4701_v48 = vld [vmem:[%s6179_s7 + $0x290] ss:$8 sps:$4 sm:$0xff]  }
 0x410   :  { %3499 = vmatpush2.bf16.msra.mxu1 %v4647_v49  ;;  %v4706_v49 = vld [vmem:[%s6179_s7 + $0x284] ss:$8 sps:$4 sm:$0xff]  }
 0x411   :  { %3500 = vmatprep.subr.bf16.mxu1 %v4652_v50  ;;  %v4710_v50 = vld [vmem:[%s6179_s7 + $0x320] ss:$8 sps:$4 sm:$0xff]  }
 0x412   :  { %3518 = vmatpush1.bf16.msra.mxu0 %v4659_v52  ;;  %v4715_v52 = vld [vmem:[%s6179_s7 + $0x314] ss:$8 sps:$4 sm:$0xff]  }
 0x413   :  { %3519 = vmatprep.subr.bf16.mxu0 %v4667_v54  ;;  %v4704_v54 = vld [vmem:[%s6179_s7 + $0x280] ss:$8 sps:$4 sm:$0xff]  }
 0x414   :  { %3501 = vmatpush2.bf16.msra.mxu1 %v4650_v55  ;;  %v4713_v55 = vld [vmem:[%s6179_s7 + $0x310] ss:$8 sps:$4 sm:$0xff]  }
 0x415   :  { %3502 = vmatprep.subr.bf16.mxu1 %v4658_v56  ;;  %v4718_v56 = vld [vmem:[%s6179_s7 + $0x304] ss:$8 sps:$4 sm:$0xff]  }
 0x416   :  { %3520 = vmatpush1.bf16.msra.mxu0 %v4665_v58  ;;  %v1338_v58 = vsub.s32 4, %v4829_v13 }
 0x417   :  { %3521 = vmatprep.subr.bf16.mxu0 %v4670_v57 }
 0x418   :  { %3503 = vmatpush2.bf16.msra.mxu1 %v4656_v59  ;;  %v1342_v59 = vsub.s32 5, %v4829_v13 }
 0x419   :  { %3504 = vmatprep.subr.bf16.mxu1 %v4664_v60 }
 0x41a   :  { %3522 = vmatpush1.bf16.msra.mxu0 %v4668_v61  ;;  %v1339_v61 = vrot.slane %v5931_v3, %v1338_v58 }
 0x41b   :  { %3523 = vmatprep.subr.bf16.mxu0 %v4673_v63 }
 0x41c   :  { %3505 = vmatpush2.bf16.msra.mxu1 %v4662_v0  ;;  %v1343_v0 = vrot.slane %v5931_v3, %v1342_v59 }
 0x41d   :  { %3564 = vmatprep.subr.bf16.mxu1 %v4709_v1 }
 0x41e   :  { %3524 = vmatpush1.bf16.msra.mxu0 %v4671_v62 }
 0x41f   :  { %3525 = vmatprep.subr.bf16.mxu0 %v4676_v4 }
 0x422   :  { %3526 = vmatpush1.bf16.msra.mxu0 %v4674_v5 }
 0x423   :  { %3527 = vmatprep.subr.bf16.mxu0 %v4679_v6 }
 0x425   :  { %v2596_v8 = vpop.f32.mrf.mxu1 }
 0x426   :  { %3528 = vmatpush1.bf16.msra.mxu0 %v4677_v51 }
 0x427   :  { %v2598_v10 = vpop.f32.mrf.mxu1  ;;  %3529 = vmatprep.subr.bf16.mxu0 %v4682_v7 }
 0x429   :  { %v2600_v14 = vpop.f32.mrf.mxu1 }
 0x42a   :  { %3530 = vmatpush1.bf16.msra.mxu0 %v4680_v9 }
 0x42b   :  { %v2601_v16 = vpop.f32.mrf.mxu1  ;;  %3531 = vmatprep.subr.bf16.mxu0 %v4685_v12 }
 0x42e   :  { %3532 = vmatpush2.bf16.msra.mxu0 %v4683_v15 }
 0x42f   :  { %3533 = vmatprep.subr.bf16.mxu0 %v4688_v17 }
 0x432   :  { %3534 = vmatpush2.bf16.msra.mxu0 %v4686_v19 }
 0x433   :  { %3535 = vmatprep.subr.bf16.mxu0 %v4691_v20 }
 0x435   :  { %v2555_v29 = vpop.f32.mrf.mxu0 }
 0x436   :  { %v2556_v30 = vadd.f32 %v2555_v29, %v1331_v23  ;;  %3536 = vmatpush2.bf16.msra.mxu0 %v4689_v24  ;;  %v1346_v23 = vsub.s32 6, %v4829_v13 }
 0x437   :  { %v2557_v31 = vpop.f32.mrf.mxu0  ;;  %3537 = vmatprep.subr.bf16.mxu0 %v4694_v26 }
 0x438   :  { %v2597_v53 = vadd.f32 %v2596_v8, %v2556_v30  ;;  %v2558_v33 = vadd.f32 %v2557_v31, %v1335_v28  ;;  %v1347_v26 = vrot.slane %v5931_v3, %v1346_v23  ;;  %v2897_v3 = vld [vmem:[%s6180_s8] sm:$0x3]  ;;  %s4751_s8 = smov [#allocation2]  }
 0x439   :  { %v2559_v34 = vpop.f32.mrf.mxu0  ;;  %s3624_s29 = sshll.u32 %s4751_s8, 4  ;;  %s3625_s29 = int_to_ptr.vmem [resolvable:$true] %s3624_s29 }
 0x43a   :  { %vm2767_vm10 = vcmp.gt.f32.partialorder %v2597_v53, 0.0  ;;  %v2774_v35 = vmul.f32 0.01, %v2597_v53  ;;  %v2599_v36 = vadd.f32 %v2598_v10, %v2558_v33  ;;  %3538 = vmatpush2.bf16.msra.mxu0 %v4692_v27  ;;  %s4723_s4 = scalar_lea.vmem %s3625_s29, 64  ;;  %p4728_p1 = scmp.lt.s32.totalorder %s3625_s29, %s3625_s29 }
 0x43b   :  { %v2560_v38 = vpop.f32.mrf.mxu0  ;;  %3539 = vmatprep.subr.bf16.mxu0 %v4697_v32  ;;  %p4724_p0 = scmp.ne.s32.totalorder %s3625_s29, %s4723_s4  ;;  %p4729_p2 = scmp.lt.s32.totalorder %s4723_s4, %s4723_s4 }
 0x43c   :  { %v2775_v40 = vmul.f32 0.01, %v2599_v36  ;;  %vm2768_vm11 = vcmp.gt.f32.partialorder %v2599_v36, 0.0  ;;  %v2781_v41 = vsel %vm2767_vm10, %v2597_v53, %v2774_v35 }
 0x43d   :  { %v2788_v46 = vpack.c.bf16 %v2781_v41, %v2781_v41  ;;  %p4730_p3 = por %p4729_p2, %p4728_p1 }
 0x43e   :  { %v2782_v42 = vsel %vm2768_vm11, %v2599_v36, %v2775_v40  ;;  %3540 = vmatpush2.bf16.msra.mxu0 %v4695_v37  ;;  %v2906_v40 = vrot.slane %v2897_v3, %v1326_v22 }
 0x43f   :  { %v2789_v44 = vpack.c.bf16 %v2782_v42, %v2782_v42  ;;  %3541 = vmatprep.subr.bf16.mxu0 %v4700_v39  ;;  %v2902_v39 = vrot.slane %v2897_v3, %v1322_v11  ;;  %p4731_p4 = pnand %p4730_p3, %p4724_p0 }
 0x441   :  { %3506 = vmatprep.mubr.bf16.mxu1 %v2789_v44 }
 0x442   :  { %3507 = vmatmul.mubr.bf16.vlgmr.msra.gmra.mxu1 %v2788_v46  ;;  %3542 = vmatpush2.bf16.msra.mxu0 %v4698_v43 }
 0x443   :  { %3543 = vmatprep.subr.bf16.mxu0 %v4703_v45  ;;  %3565 = vmatpush1.bf16.msra.mxu1 %v4707_v25 }
 0x444   :  { %3566 = vmatprep.subr.bf16.mxu1 %v4712_v47  ;;  %3588 = vmatprep.mubr.bf16.mxu1 %v4745_v2  ;;  %v4716_v2 = vld [vmem:[%s6179_s7 + $0x300] ss:$8 sps:$4 sm:$0xff]  }
 0x446   :  { %3544 = vmatpush2.bf16.msra.mxu0 %v4701_v48 }
 0x447   :  { %3545 = vmatprep.subr.bf16.mxu0 %v4706_v49  ;;  %3567 = vmatpush1.bf16.msra.mxu1 %v4710_v50 }
 0x448   :  { %3568 = vmatprep.subr.bf16.mxu1 %v4715_v52 }
 0x44a   :  { %3546 = vmatpush2.bf16.msra.mxu0 %v4704_v54  ;;  %v4750_v54 = vmov 1983009808  }
 0x44b   :  { %3569 = vmatpush1.bf16.msra.mxu1 %v4713_v55  ;;  %v3607_v55 = vunpack.c.l.s4 %v4750_v54 }
 0x44c   :  { %3570 = vmatprep.subr.bf16.mxu1 %v4718_v56 }
 0x44d   :  { %v3608_v22 = vunpack.c.0.s8 %v3607_v55 }
 0x44f   :  { %3571 = vmatpush1.bf16.msra.mxu1 %v4716_v2 }
 0x465   :  { %v2637_v57 = vpop.f32.mrf.mxu1 }
 0x466   :  { %v2638_v62 = vadd.f32 %v2637_v57, %v1339_v61 }
 0x467   :  { %v2639_v60 = vpop.f32.mrf.mxu1 }
 0x468   :  { %v2640_v5 = vadd.f32 %v2639_v60, %v1343_v0 }
 0x469   :  { %v2641_v63 = vpop.f32.mrf.mxu1 }
 0x46b   :  { %v2642_v1 = vpop.f32.mrf.mxu1 }
 0x46c   :  { %v3611_v1 = vsub.s32 %v3608_v22, %v4829_v13 }
 0x46d   :  { %v2678_v4 = vpop.f32.mrf.mxu0 }
 0x46e   :  { %v2679_v6 = vadd.f32 %v2678_v4, %v2638_v62 }
 0x46f   :  { %v2680_v51 = vpop.f32.mrf.mxu0 }
 0x470   :  { %vm2769_vm12 = vcmp.gt.f32.partialorder %v2679_v6, 0.0  ;;  %v2776_v7 = vmul.f32 0.01, %v2679_v6  ;;  %v2681_v8 = vadd.f32 %v2680_v51, %v2640_v5 }
 0x471   :  { %v2682_v9 = vpop.f32.mrf.mxu0 }
 0x472   :  { %vm2770_vm13 = vcmp.gt.f32.partialorder %v2681_v8, 0.0  ;;  %v2777_v10 = vmul.f32 0.01, %v2681_v8  ;;  %v2783_v12 = vsel %vm2769_vm12, %v2679_v6, %v2776_v7 }
 0x473   :  { %v2683_v14 = vpop.f32.mrf.mxu0  ;;  %v2790_v17 = vpack.c.bf16 %v2783_v12, %v2783_v12 }
 0x474   :  { %v2784_v15 = vsel %vm2770_vm13, %v2681_v8, %v2777_v10 }
 0x475   :  { %v2791_v16 = vpack.c.bf16 %v2784_v15, %v2784_v15 }
 0x477   :  { %3547 = vmatprep.mubr.bf16.mxu0 %v2791_v16 }
 0x478   :  { %3548 = vmatmul.mubr.bf16.vlgmr.msra.gmra.mxu0 %v2790_v17 }
 0x48d   :  { %v4101_v18 = vpop.f32.mrf.mxu0 }
 0x48f   :  { %v4102_v19 = vpop.f32.mrf.mxu0 }
 0x490   :  { %v4103_v24 = vadd.f32 %v4102_v19, %v4101_v18 }
 0x491   :  { %v4104_v20 = vpop.f32.mrf.mxu0 }
 0x492   :  { %v2720_v28 = vadd.f32 %v4103_v24, %v1347_v26 }
 0x493   :  { %v4105_v21 = vpop.f32.mrf.mxu0 }
 0x49e   :  { %v2759_v29 = vpop.f32.mrf.mxu1 }
 0x49f   :  { %v2760_v30 = vadd.f32 %v2759_v29, %v2720_v28 }
 0x4a0   :  { %v2761_v27 = vpop.f32.mrf.mxu1 }
 0x4a1   :  { %vm2771_vm14 = vcmp.gt.f32.partialorder %v2760_v30, 0.0  ;;  %v2778_v31 = vmul.f32 0.01, %v2760_v30 }
 0x4a2   :  { %v2762_v32 = vpop.f32.mrf.mxu1 }
 0x4a3   :  { %v2785_v53 = vsel %vm2771_vm14, %v2760_v30, %v2778_v31 }
 0x4a4   :  { %v2792_v33 = vpack.c.bf16 %v2785_v53, %v2785_v53  ;;  %v2763_v34 = vpop.f32.mrf.mxu1 }
 0x4a6   :  { %4058 = vmatmul.mubr.msk.bf16.vlgmr.msra.gmra.mxu1 %vm3429_vm15, %v2792_v33 }
 0x4cd   :  { %v3467_v35 = vpop.f32.mrf.mxu0 }
 0x4ce   :  { %v3468_v41 = vadd.f32 %v3467_v35, %v2902_v39 }
 0x4cf   :  { %v3469_v36 = vpop.f32.mrf.mxu0 }
 0x4d0   :  { %v3470_v43 = vadd.f32 %v3469_v36, %v2906_v40 }
 0x4d1   :  { %v3471_v37 = vpop.f32.mrf.mxu0 }
 0x4d3   :  { %v3472_v38 = vpop.f32.mrf.mxu0 }
 0x502   :  { %v3508_v42 = vpop.f32.mrf.mxu1 }
 0x503   :  { %v3509_v44 = vadd.f32 %v3508_v42, %v3468_v41 }
 0x504   :  { %v3510_v45 = vpop.f32.mrf.mxu1 }
 0x505   :  { %v3511_v25 = vadd.f32 %v3510_v45, %v3470_v43 }
 0x506   :  { %v3512_v46 = vpop.f32.mrf.mxu1 }
 0x508   :  { %v3513_v47 = vpop.f32.mrf.mxu1 }
 0x538   :  { %v3549_v48 = vpop.f32.mrf.mxu0 }
 0x539   :  { %v3550_v56 = vadd.f32 %v3549_v48, %v3509_v44 }
 0x53a   :  { %v3551_v49 = vpop.f32.mrf.mxu0 }
 0x53b   :  { %v3552_v11 = vadd.f32 %v3551_v49, %v3511_v25 }
 0x53c   :  { %v3553_v50 = vpop.f32.mrf.mxu0 }
 0x53e   :  { %v3554_v52 = vpop.f32.mrf.mxu0 }
 0x566   :  { %v3590_v2 = vpop.f32.mrf.mxu1 }
 0x567   :  { %v3591_v58 = vadd.f32 %v3590_v2, %v3550_v56 }
 0x568   :  { %v3592_v57 = vpop.f32.mrf.mxu1 }
 0x569   :  { %v3599_v59 = vmul.f32 0.01, %v3591_v58  ;;  %v3593_v60 = vadd.f32 %v3592_v57, %v3552_v11  ;;  %vm3597_vm0 = vcmp.gt.f32.partialorder %v3591_v58, 0.0 }
 0x56a   :  { %v3594_v61 = vpop.f32.mrf.mxu1 }
 0x56b   :  { %vm3598_vm1 = vcmp.gt.f32.partialorder %v3593_v60, 0.0  ;;  %v3600_v63 = vmul.f32 0.01, %v3593_v60  ;;  %v3601_v62 = vsel %vm3597_vm0, %v3591_v58, %v3599_v59 }
 0x56c   :  { %v3595_v0 = vpop.f32.mrf.mxu1 }
 0x56d   :  { %v3602_v4 = vsel %vm3598_vm1, %v3593_v60, %v3600_v63 }
 0x56e   :  { %v3605_v5 = vcombine.low %v3601_v62, %v3602_v4 }
 0x570   :  { %v3612_v6 = vrot.slane %v3605_v5, %v3611_v1 }
 0x572   :  { %3617 = vst.msk [vmem:[#allocation2] sm:$0xf] %vm3616_vm4, %v3612_v6 }
 0x573   :  { %4734 = shalt.err (!%p4731_p4)
}
 0x574   :  { %3627 = dma.vmem_to_hbm [thread:$0]  %s3625_s29, 64, %s6181_s9, [#allocation3]  }
 0x575   :  { %4743 = dma.done.wait [#allocation3], 64  }
 0x576   :  { %4744 = vsyncadd [#allocation3], 4294967232 }
 0x577   :  { %3631 = vsyncpa [#allocation3], 1 }

</bundles_post_ra>
